<compile_context>
chip_gen: v7x
topology: tpu7x:2x2x1
jax: 0.10.0
libtpu: 0.0.40
codegen_flags: <defaults>
</compile_context>

<pallas_src>
import functools
import math

import jax
import jax.numpy as jnp
from jax.experimental import pallas as pl
from jax.experimental.pallas import tpu as pltpu
from jax.scipy.special import erf as _erf_exact

_SIGMA = 0.1
_LN_EPS = 1e-5
_BN_EPS = 1e-5
_INV_SQRT2 = 1.0 / math.sqrt(2.0)
_RBF_SCALE = -1.0 / (2.0 * _SIGMA * _SIGMA)


def _erf(x):
    # Abramowitz & Stegun 7.1.26 (|error| < 1.5e-7): matches torch's exact
    # (erf-form) nn.GELU to f32 rounding without relying on an erf lowering in
    # Mosaic.  Uses only exp / mul / add / div / select, which all lower.
    p = 0.3275911
    a1, a2, a3, a4, a5 = (0.254829592, -0.284496736, 1.421413741,
                          -1.453152027, 1.061405429)
    ax = jnp.abs(x)
    t = 1.0 / (1.0 + p * ax)
    poly = ((((a5 * t + a4) * t + a3) * t + a2) * t + a1) * t
    y = 1.0 - poly * jnp.exp(-ax * ax)
    return jnp.where(x < 0.0, -y, y)


def _gelu(x):
    return 0.5 * x * (1.0 + _erf(x * _INV_SQRT2))


def _layer_norm(x, gamma, beta):
    mu = jnp.mean(x, axis=-1, keepdims=True)
    var = jnp.mean(jnp.square(x - mu), axis=-1, keepdims=True)
    return (x - mu) * jax.lax.rsqrt(var + _LN_EPS) * gamma + beta


def _batch_norm_train(x, gamma, beta):
    # BatchNorm1d, training mode: biased statistics over the batch axis.
    # TODO(synk): an eval-mode deployment needs running_mean/var folded into a
    # per-feature scale/shift (and would allow a batch-parallel grid).
    mu = jnp.mean(x, axis=0, keepdims=True)
    var = jnp.mean(jnp.square(x - mu), axis=0, keepdims=True)
    return (x - mu) * jax.lax.rsqrt(var + _BN_EPS) * gamma + beta


def _projection_head(x, w1_bf16, w2_bf16, b1, b2, ln_g, ln_b):
    # RBF transform in f32 (EUP exp); only the MXU operands go to bf16.
    x = jnp.exp(x * x * _RBF_SCALE)
    proj = jnp.dot(x.astype(jnp.bfloat16), w1_bf16,
                   preferred_element_type=jnp.float32) + b1
    h = _gelu(proj)
    h = jnp.dot(h.astype(jnp.bfloat16), w2_bf16,
                preferred_element_type=jnp.float32) + b2 + proj
    h = _layer_norm(h, ln_g, ln_b)
    return jnp.maximum(h, 0.0)  # Encoder.forward applies relu to each head


def _encoder_kernel(desc_ref, seq_ref, we_ref, wh_ref, vec_ref, out_ref,
                    *, e_desc, e_seq, hidden):
    H = hidden
    vecs = vec_ref[...]                                     # [14, H] f32
    bd1, bd2 = vecs[0:1, :], vecs[1:2, :]
    lnd_g, lnd_b = vecs[2:3, :], vecs[3:4, :]
    bs1, bs2 = vecs[4:5, :], vecs[5:6, :]
    lns_g, lns_b = vecs[6:7, :], vecs[7:8, :]
    b1, bn1_g, bn1_b = vecs[8:9, :], vecs[9:10, :], vecs[10:11, :]
    b2, bn2_g, bn2_b = vecs[11:12, :], vecs[12:13, :], vecs[13:14, :]

    # Static carves of the packed bf16 weight slabs (no runtime indexing cost).
    wd1 = we_ref[0:e_desc, :]                               # [Ed, H]
    ws1 = we_ref[e_desc:e_desc + e_seq, :]                  # [Es, H]
    wd2 = wh_ref[0 * H:1 * H, :]                            # [H, H]
    ws2 = wh_ref[1 * H:2 * H, :]                            # [H, H]
    w1 = wh_ref[2 * H:4 * H, :]                             # [2H, H]
    w2 = wh_ref[4 * H:5 * H, :]                             # [H, H]

    desc_proj = _projection_head(desc_ref[...], wd1, wd2, bd1, bd2, lnd_g, lnd_b)
    seq_proj = _projection_head(seq_ref[...], ws1, ws2, bs1, bs2, lns_g, lns_b)

    # torch.cat along the lane axis of two VMEM-resident [B,H] tiles is cheap;
    # one K=2H matmul replaces two K=H matmuls + a VPU add.
    combined = jnp.concatenate([desc_proj, seq_proj], axis=-1)       # [B, 2H]
    h = jnp.dot(combined.astype(jnp.bfloat16), w1,
                preferred_element_type=jnp.float32) + b1
    h = jnp.maximum(_batch_norm_train(h, bn1_g, bn1_b), 0.0)
    h = jnp.dot(h.astype(jnp.bfloat16), w2,
                preferred_element_type=jnp.float32) + b2
    out_ref[...] = _batch_norm_train(h, bn2_g, bn2_b)


def prepare_encoder_params(p):
    """One-time packing / casting of the parameter pytree (hoisted out of the
    per-call path). Returns two bf16 weight slabs and one f32 vector slab."""
    f32, bf16 = jnp.float32, jnp.bfloat16
    we = jnp.concatenate([p["wd1"], p["ws1"]], axis=0).astype(bf16)   # [Ed+Es, H]
    wh = jnp.concatenate([p["wd2"], p["ws2"], p["w1"], p["w2"]],
                         axis=0).astype(bf16)                         # [5H, H]
    vec = jnp.stack([
        p["bd1"], p["bd2"], p["lnd_g"], p["lnd_b"],
        p["bs1"], p["bs2"], p["lns_g"], p["lns_b"],
        p["b1"], p["bn1_g"], p["bn1_b"],
        p["b2"], p["bn2_g"], p["bn2_b"],
    ]).astype(f32)                                                    # [14, H]
    return dict(we=we, wh=wh, vec=vec)


@jax.jit
def encoder_forward(desc_embed, seq_embed, prep):
    """desc_embed: [B, Ed], seq_embed: [B, Es], prep: prepare_encoder_params()."""
    we, wh, vec = prep["we"], prep["wh"], prep["vec"]
    B, e_desc = desc_embed.shape
    e_seq = seq_embed.shape[1]
    H = wh.shape[1]
    if desc_embed.dtype != jnp.float32:
        desc_embed = desc_embed.astype(jnp.float32)
    if seq_embed.dtype != jnp.float32:
        seq_embed = seq_embed.astype(jnp.float32)

    # Explicit VMEM budget (no grid -> single-buffered operands); 2x headroom,
    # capped at 64 MiB which is v7x's physical per-core VMEM.
    operand_bytes = sum(int(a.size) * a.dtype.itemsize
                        for a in (desc_embed, seq_embed, we, wh, vec))
    operand_bytes += B * H * 4                      # output tile
    scratch_bytes = 16 * B * 2 * H * 4              # f32 intermediates
    vmem_limit = int(min(64 * 1024 * 1024,
                         max(32 * 1024 * 1024,
                             2 * operand_bytes + scratch_bytes)))

    kernel = functools.partial(_encoder_kernel,
                               e_desc=e_desc, e_seq=e_seq, hidden=H)
    vmem = pl.BlockSpec(memory_space=pltpu.MemorySpace.VMEM)
    # TODO(synk): for O(1000+)-row batches add a "parallel" batch grid (weight
    # index_maps constant so weights stay VMEM-resident) -- this requires a
    # two-pass / cross-tile BatchNorm since training-mode stats span the batch.
    return pl.pallas_call(
        kernel,
        out_shape=jax.ShapeDtypeStruct((B, H), jnp.float32),
        in_specs=[vmem] * 5,
        out_specs=vmem,
        compiler_params=pltpu.CompilerParams(vmem_limit_bytes=vmem_limit),
    )(desc_embed, seq_embed, we, wh, vec)


def _reference(desc_embed, seq_embed, p):
    """Pure-JAX f32 reference matching the PyTorch module (exact erf GELU)."""
    def gelu(x):
        return 0.5 * x * (1.0 + _erf_exact(x * _INV_SQRT2))

    def head(x, w1, b1, w2, b2, g, bt):
        x = jnp.exp(-x * x / (2.0 * _SIGMA ** 2))
        proj = x @ w1 + b1
        h = gelu(proj)
        h = h @ w2 + b2 + proj
        mu = jnp.mean(h, -1, keepdims=True)
        var = jnp.mean((h - mu) ** 2, -1, keepdims=True)
        h = (h - mu) / jnp.sqrt(var + _LN_EPS) * g + bt
        return jnp.maximum(h, 0.0)

    def bn(x, g, bt):
        mu = jnp.mean(x, 0, keepdims=True)
        var = jnp.mean((x - mu) ** 2, 0, keepdims=True)
        return (x - mu) / jnp.sqrt(var + _BN_EPS) * g + bt

    dp = head(desc_embed, p["wd1"], p["bd1"], p["wd2"], p["bd2"],
              p["lnd_g"], p["lnd_b"])
    sp = head(seq_embed, p["ws1"], p["bs1"], p["ws2"], p["bs2"],
              p["lns_g"], p["lns_b"])
    comb = jnp.concatenate([dp, sp], axis=-1)
    h = comb @ p["w1"] + p["b1"]
    h = jnp.maximum(bn(h, p["bn1_g"], p["bn1_b"]), 0.0)
    h = h @ p["w2"] + p["b2"]
    return bn(h, p["bn2_g"], p["bn2_b"])


if __name__ == "__main__":
    # Small, lane/sublane-friendly shapes consistent with the module structure
    # (module defaults: desc/seq embed 768, hidden 512).
    B = 16           # batch (multiple of 8 sublanes)
    DESC_E = 256     # desc_embed_dim
    SEQ_E = 320      # seq_embed_dim (different from DESC_E to exercise the carve)
    H = 128          # hidden_dim (full lane width)

    key = jax.random.PRNGKey(0)
    ks = jax.random.split(key, 16)

    def linear_init(kw, kb, fan_in, fan_out):
        bound = 1.0 / math.sqrt(fan_in)
        w = jax.random.uniform(kw, (fan_in, fan_out), jnp.float32, -bound, bound)
        b = jax.random.uniform(kb, (fan_out,), jnp.float32, -bound, bound)
        return w, b

    wd1, bd1 = linear_init(ks[0], ks[1], DESC_E, H)
    wd2, bd2 = linear_init(ks[2], ks[3], H, H)
    ws1, bs1 = linear_init(ks[4], ks[5], SEQ_E, H)
    ws2, bs2 = linear_init(ks[6], ks[7], H, H)
    w1, b1 = linear_init(ks[8], ks[9], 2 * H, H)
    w2, b2 = linear_init(ks[10], ks[11], H, H)

    ones = jnp.ones((H,), jnp.float32)
    zeros = jnp.zeros((H,), jnp.float32)
    params = dict(
        wd1=wd1, bd1=bd1, wd2=wd2, bd2=bd2, lnd_g=ones, lnd_b=zeros,
        ws1=ws1, bs1=bs1, ws2=ws2, bs2=bs2, lns_g=ones, lns_b=zeros,
        w1=w1, b1=b1, bn1_g=ones, bn1_b=zeros,
        w2=w2, b2=b2, bn2_g=ones, bn2_b=zeros,
    )

    # One-time packing / bf16 cast, hoisted out of the per-call path.
    prep = prepare_encoder_params(params)

    # Scale 0.15 keeps the RBF exp(-x^2/0.02) away from its saturated-0 regime
    # so the numeric check has real power.
    desc_embed = 0.15 * jax.random.normal(ks[12], (B, DESC_E), jnp.float32)
    seq_embed = 0.15 * jax.random.normal(ks[13], (B, SEQ_E), jnp.float32)

    out = encoder_forward(desc_embed, seq_embed, prep)
    out = jax.block_until_ready(out)

    ref = _reference(desc_embed, seq_embed, params)
    assert out.shape == (B, H)
    assert bool(jnp.all(jnp.isfinite(out)))
    max_diff = float(jnp.max(jnp.abs(out - ref)))
    assert jnp.allclose(out, ref, atol=5e-2, rtol=5e-2), max_diff

    print("KERNEL_OK")
</pallas_src>

<mosaic_0001>
module attributes {stable_mosaic.version = 11 : i64} {
  func.func @_encoder_kernel(%arg0: memref<16x256xf32, #tpu.memory_space<vmem>>, %arg1: memref<16x320xf32, #tpu.memory_space<vmem>>, %arg2: memref<576x128xbf16, #tpu.memory_space<vmem>>, %arg3: memref<640x128xbf16, #tpu.memory_space<vmem>>, %arg4: memref<14x128xf32, #tpu.memory_space<vmem>>, %arg5: memref<16x128xf32, #tpu.memory_space<vmem>>) attributes {dimension_semantics = [], scalar_prefetch = 0 : i64, scratch_operands = 0 : i64, tpu.core_type = #tpu.core_type<tc>} {
    %c0 = arith.constant 0 : index
    %c0_0 = arith.constant 0 : index
    %0 = vector.load %arg4[%c0, %c0_0] : memref<14x128xf32, #tpu.memory_space<vmem>>, vector<14x128xf32>
    %1 = vector.extract_strided_slice %0 {offsets = [0, 0], sizes = [1, 128], strides = [1, 1]} : vector<14x128xf32> to vector<1x128xf32>
    %2 = vector.extract_strided_slice %0 {offsets = [1, 0], sizes = [1, 128], strides = [1, 1]} : vector<14x128xf32> to vector<1x128xf32>
    %3 = vector.extract_strided_slice %0 {offsets = [2, 0], sizes = [1, 128], strides = [1, 1]} : vector<14x128xf32> to vector<1x128xf32>
    %4 = vector.extract_strided_slice %0 {offsets = [3, 0], sizes = [1, 128], strides = [1, 1]} : vector<14x128xf32> to vector<1x128xf32>
    %5 = vector.extract_strided_slice %0 {offsets = [4, 0], sizes = [1, 128], strides = [1, 1]} : vector<14x128xf32> to vector<1x128xf32>
    %6 = vector.extract_strided_slice %0 {offsets = [5, 0], sizes = [1, 128], strides = [1, 1]} : vector<14x128xf32> to vector<1x128xf32>
    %7 = vector.extract_strided_slice %0 {offsets = [6, 0], sizes = [1, 128], strides = [1, 1]} : vector<14x128xf32> to vector<1x128xf32>
    %8 = vector.extract_strided_slice %0 {offsets = [7, 0], sizes = [1, 128], strides = [1, 1]} : vector<14x128xf32> to vector<1x128xf32>
    %9 = vector.extract_strided_slice %0 {offsets = [8, 0], sizes = [1, 128], strides = [1, 1]} : vector<14x128xf32> to vector<1x128xf32>
    %10 = vector.extract_strided_slice %0 {offsets = [9, 0], sizes = [1, 128], strides = [1, 1]} : vector<14x128xf32> to vector<1x128xf32>
    %11 = vector.extract_strided_slice %0 {offsets = [10, 0], sizes = [1, 128], strides = [1, 1]} : vector<14x128xf32> to vector<1x128xf32>
    %12 = vector.extract_strided_slice %0 {offsets = [11, 0], sizes = [1, 128], strides = [1, 1]} : vector<14x128xf32> to vector<1x128xf32>
    %13 = vector.extract_strided_slice %0 {offsets = [12, 0], sizes = [1, 128], strides = [1, 1]} : vector<14x128xf32> to vector<1x128xf32>
    %14 = vector.extract_strided_slice %0 {offsets = [13, 0], sizes = [1, 128], strides = [1, 1]} : vector<14x128xf32> to vector<1x128xf32>
    %c0_1 = arith.constant 0 : index
    %c0_2 = arith.constant 0 : index
    %15 = vector.load %arg2[%c0_1, %c0_2] : memref<576x128xbf16, #tpu.memory_space<vmem>>, vector<256x128xbf16>
    %c256 = arith.constant 256 : index
    %c0_3 = arith.constant 0 : index
    %16 = vector.load %arg2[%c256, %c0_3] : memref<576x128xbf16, #tpu.memory_space<vmem>>, vector<320x128xbf16>
    %c0_4 = arith.constant 0 : index
    %c0_5 = arith.constant 0 : index
    %17 = vector.load %arg3[%c0_4, %c0_5] : memref<640x128xbf16, #tpu.memory_space<vmem>>, vector<128x128xbf16>
    %c128 = arith.constant 128 : index
    %c0_6 = arith.constant 0 : index
    %18 = vector.load %arg3[%c128, %c0_6] : memref<640x128xbf16, #tpu.memory_space<vmem>>, vector<128x128xbf16>
    %c256_7 = arith.constant 256 : index
    %c0_8 = arith.constant 0 : index
    %19 = vector.load %arg3[%c256_7, %c0_8] : memref<640x128xbf16, #tpu.memory_space<vmem>>, vector<256x128xbf16>
    %c512 = arith.constant 512 : index
    %c0_9 = arith.constant 0 : index
    %20 = vector.load %arg3[%c512, %c0_9] : memref<640x128xbf16, #tpu.memory_space<vmem>>, vector<128x128xbf16>
    %c0_10 = arith.constant 0 : index
    %c0_11 = arith.constant 0 : index
    %21 = vector.load %arg0[%c0_10, %c0_11] : memref<16x256xf32, #tpu.memory_space<vmem>>, vector<16x256xf32>
    %22 = arith.mulf %21, %21 : vector<16x256xf32>
    %cst = arith.constant -5.000000e+01 : f32
    %23 = vector.broadcast %cst : f32 to vector<16x256xf32>
    %24 = arith.mulf %22, %23 : vector<16x256xf32>
    %25 = math.exp %24 : vector<16x256xf32>
    %26 = arith.truncf %25 : vector<16x256xf32> to vector<16x256xbf16>
    %cst_12 = arith.constant dense<0.000000e+00> : vector<16x128xf32>
    %27 = tpu.matmul %26, %15, %cst_12 {dimension_numbers = #tpu.dot_dimension_numbers<[1], [0], [0], [1], [0, 0, 1, 1], [], []>} : vector<16x256xbf16>, vector<256x128xbf16>, vector<16x128xf32> -> vector<16x128xf32>
    %28 = vector.broadcast %1 : vector<1x128xf32> to vector<16x128xf32>
    %29 = arith.addf %27, %28 : vector<16x128xf32>
    %cst_13 = arith.constant 5.000000e-01 : f32
    %30 = vector.broadcast %cst_13 : f32 to vector<16x128xf32>
    %31 = arith.mulf %30, %29 : vector<16x128xf32>
    %cst_14 = arith.constant 0.707106769 : f32
    %32 = vector.broadcast %cst_14 : f32 to vector<16x128xf32>
    %33 = arith.mulf %29, %32 : vector<16x128xf32>
    %34 = math.absf %33 : vector<16x128xf32>
    %cst_15 = arith.constant 0.327591091 : f32
    %35 = vector.broadcast %cst_15 : f32 to vector<16x128xf32>
    %36 = arith.mulf %35, %34 : vector<16x128xf32>
    %cst_16 = arith.constant 1.000000e+00 : f32
    %37 = vector.broadcast %cst_16 : f32 to vector<16x128xf32>
    %38 = arith.addf %37, %36 : vector<16x128xf32>
    %cst_17 = arith.constant 1.000000e+00 : f32
    %39 = vector.broadcast %cst_17 : f32 to vector<16x128xf32>
    %40 = arith.divf %39, %38 : vector<16x128xf32>
    %cst_18 = arith.constant 1.06140542 : f32
    %41 = vector.broadcast %cst_18 : f32 to vector<16x128xf32>
    %42 = arith.mulf %41, %40 : vector<16x128xf32>
    %cst_19 = arith.constant -1.45315206 : f32
    %43 = vector.broadcast %cst_19 : f32 to vector<16x128xf32>
    %44 = arith.addf %42, %43 : vector<16x128xf32>
    %45 = arith.mulf %44, %40 : vector<16x128xf32>
    %cst_20 = arith.constant 1.42141378 : f32
    %46 = vector.broadcast %cst_20 : f32 to vector<16x128xf32>
    %47 = arith.addf %45, %46 : vector<16x128xf32>
    %48 = arith.mulf %47, %40 : vector<16x128xf32>
    %cst_21 = arith.constant -0.284496725 : f32
    %49 = vector.broadcast %cst_21 : f32 to vector<16x128xf32>
    %50 = arith.addf %48, %49 : vector<16x128xf32>
    %51 = arith.mulf %50, %40 : vector<16x128xf32>
    %cst_22 = arith.constant 0.254829586 : f32
    %52 = vector.broadcast %cst_22 : f32 to vector<16x128xf32>
    %53 = arith.addf %51, %52 : vector<16x128xf32>
    %54 = arith.mulf %53, %40 : vector<16x128xf32>
    %cst_23 = arith.constant 0.000000e+00 : f32
    %55 = vector.broadcast %cst_23 : f32 to vector<16x128xf32>
    %56 = arith.subf %55, %34 : vector<16x128xf32>
    %57 = arith.mulf %56, %34 : vector<16x128xf32>
    %58 = math.exp %57 : vector<16x128xf32>
    %59 = arith.mulf %54, %58 : vector<16x128xf32>
    %cst_24 = arith.constant 1.000000e+00 : f32
    %60 = vector.broadcast %cst_24 : f32 to vector<16x128xf32>
    %61 = arith.subf %60, %59 : vector<16x128xf32>
    %cst_25 = arith.constant 0.000000e+00 : f32
    %62 = vector.broadcast %cst_25 : f32 to vector<16x128xf32>
    %63 = arith.cmpf olt, %33, %62 : vector<16x128xf32>
    %cst_26 = arith.constant 0.000000e+00 : f32
    %64 = vector.broadcast %cst_26 : f32 to vector<16x128xf32>
    %65 = arith.subf %64, %61 : vector<16x128xf32>
    %66 = arith.select %63, %65, %61 : vector<16x128xi1>, vector<16x128xf32>
    %cst_27 = arith.constant 1.000000e+00 : f32
    %67 = vector.broadcast %cst_27 : f32 to vector<16x128xf32>
    %68 = arith.addf %67, %66 : vector<16x128xf32>
    %69 = arith.mulf %31, %68 : vector<16x128xf32>
    %70 = arith.truncf %69 : vector<16x128xf32> to vector<16x128xbf16>
    %cst_28 = arith.constant dense<0.000000e+00> : vector<16x128xf32>
    %71 = tpu.matmul %70, %17, %cst_28 {dimension_numbers = #tpu.dot_dimension_numbers<[1], [0], [0], [1], [0, 0, 1, 1], [], []>} : vector<16x128xbf16>, vector<128x128xbf16>, vector<16x128xf32> -> vector<16x128xf32>
    %72 = vector.broadcast %2 : vector<1x128xf32> to vector<16x128xf32>
    %73 = arith.addf %71, %72 : vector<16x128xf32>
    %74 = arith.addf %73, %29 : vector<16x128xf32>
    %cst_29 = arith.constant dense<0.000000e+00> : vector<16xf32>
    %75 = vector.multi_reduction <add>, %74, %cst_29 [1] : vector<16x128xf32> to vector<16xf32>
    %76 = vector.shape_cast %75 : vector<16xf32> to vector<16x1xf32>
    %cst_30 = arith.constant 1.280000e+02 : f32
    %77 = vector.broadcast %cst_30 : f32 to vector<16x1xf32>
    %78 = arith.divf %76, %77 : vector<16x1xf32>
    %79 = vector.broadcast %78 : vector<16x1xf32> to vector<16x128xf32>
    %80 = arith.subf %74, %79 : vector<16x128xf32>
    %81 = arith.mulf %80, %80 : vector<16x128xf32>
    %cst_31 = arith.constant dense<0.000000e+00> : vector<16xf32>
    %82 = vector.multi_reduction <add>, %81, %cst_31 [1] : vector<16x128xf32> to vector<16xf32>
    %83 = vector.shape_cast %82 : vector<16xf32> to vector<16x1xf32>
    %cst_32 = arith.constant 1.280000e+02 : f32
    %84 = vector.broadcast %cst_32 : f32 to vector<16x1xf32>
    %85 = arith.divf %83, %84 : vector<16x1xf32>
    %86 = vector.broadcast %78 : vector<16x1xf32> to vector<16x128xf32>
    %87 = arith.subf %74, %86 : vector<16x128xf32>
    %cst_33 = arith.constant 9.99999974E-6 : f32
    %88 = vector.broadcast %cst_33 : f32 to vector<16x1xf32>
    %89 = arith.addf %85, %88 : vector<16x1xf32>
    %90 = math.rsqrt %89 : vector<16x1xf32>
    %91 = vector.broadcast %90 : vector<16x1xf32> to vector<16x128xf32>
    %92 = arith.mulf %87, %91 : vector<16x128xf32>
    %93 = vector.broadcast %3 : vector<1x128xf32> to vector<16x128xf32>
    %94 = arith.mulf %92, %93 : vector<16x128xf32>
    %95 = vector.broadcast %4 : vector<1x128xf32> to vector<16x128xf32>
    %96 = arith.addf %94, %95 : vector<16x128xf32>
    %cst_34 = arith.constant 0.000000e+00 : f32
    %97 = vector.broadcast %cst_34 : f32 to vector<16x128xf32>
    %98 = arith.maximumf %96, %97 : vector<16x128xf32>
    %c0_35 = arith.constant 0 : index
    %c0_36 = arith.constant 0 : index
    %99 = vector.load %arg1[%c0_35, %c0_36] : memref<16x320xf32, #tpu.memory_space<vmem>>, vector<16x320xf32>
    %100 = arith.mulf %99, %99 : vector<16x320xf32>
    %cst_37 = arith.constant -5.000000e+01 : f32
    %101 = vector.broadcast %cst_37 : f32 to vector<16x320xf32>
    %102 = arith.mulf %100, %101 : vector<16x320xf32>
    %103 = math.exp %102 : vector<16x320xf32>
    %104 = arith.truncf %103 : vector<16x320xf32> to vector<16x320xbf16>
    %cst_38 = arith.constant dense<0.000000e+00> : vector<16x128xf32>
    %105 = tpu.matmul %104, %16, %cst_38 {dimension_numbers = #tpu.dot_dimension_numbers<[1], [0], [0], [1], [0, 0, 1, 1], [], []>} : vector<16x320xbf16>, vector<320x128xbf16>, vector<16x128xf32> -> vector<16x128xf32>
    %106 = vector.broadcast %5 : vector<1x128xf32> to vector<16x128xf32>
    %107 = arith.addf %105, %106 : vector<16x128xf32>
    %cst_39 = arith.constant 5.000000e-01 : f32
    %108 = vector.broadcast %cst_39 : f32 to vector<16x128xf32>
    %109 = arith.mulf %108, %107 : vector<16x128xf32>
    %cst_40 = arith.constant 0.707106769 : f32
    %110 = vector.broadcast %cst_40 : f32 to vector<16x128xf32>
    %111 = arith.mulf %107, %110 : vector<16x128xf32>
    %112 = math.absf %111 : vector<16x128xf32>
    %cst_41 = arith.constant 0.327591091 : f32
    %113 = vector.broadcast %cst_41 : f32 to vector<16x128xf32>
    %114 = arith.mulf %113, %112 : vector<16x128xf32>
    %cst_42 = arith.constant 1.000000e+00 : f32
    %115 = vector.broadcast %cst_42 : f32 to vector<16x128xf32>
    %116 = arith.addf %115, %114 : vector<16x128xf32>
    %cst_43 = arith.constant 1.000000e+00 : f32
    %117 = vector.broadcast %cst_43 : f32 to vector<16x128xf32>
    %118 = arith.divf %117, %116 : vector<16x128xf32>
    %cst_44 = arith.constant 1.06140542 : f32
    %119 = vector.broadcast %cst_44 : f32 to vector<16x128xf32>
    %120 = arith.mulf %119, %118 : vector<16x128xf32>
    %cst_45 = arith.constant -1.45315206 : f32
    %121 = vector.broadcast %cst_45 : f32 to vector<16x128xf32>
    %122 = arith.addf %120, %121 : vector<16x128xf32>
    %123 = arith.mulf %122, %118 : vector<16x128xf32>
    %cst_46 = arith.constant 1.42141378 : f32
    %124 = vector.broadcast %cst_46 : f32 to vector<16x128xf32>
    %125 = arith.addf %123, %124 : vector<16x128xf32>
    %126 = arith.mulf %125, %118 : vector<16x128xf32>
    %cst_47 = arith.constant -0.284496725 : f32
    %127 = vector.broadcast %cst_47 : f32 to vector<16x128xf32>
    %128 = arith.addf %126, %127 : vector<16x128xf32>
    %129 = arith.mulf %128, %118 : vector<16x128xf32>
    %cst_48 = arith.constant 0.254829586 : f32
    %130 = vector.broadcast %cst_48 : f32 to vector<16x128xf32>
    %131 = arith.addf %129, %130 : vector<16x128xf32>
    %132 = arith.mulf %131, %118 : vector<16x128xf32>
    %cst_49 = arith.constant 0.000000e+00 : f32
    %133 = vector.broadcast %cst_49 : f32 to vector<16x128xf32>
    %134 = arith.subf %133, %112 : vector<16x128xf32>
    %135 = arith.mulf %134, %112 : vector<16x128xf32>
    %136 = math.exp %135 : vector<16x128xf32>
    %137 = arith.mulf %132, %136 : vector<16x128xf32>
    %cst_50 = arith.constant 1.000000e+00 : f32
    %138 = vector.broadcast %cst_50 : f32 to vector<16x128xf32>
    %139 = arith.subf %138, %137 : vector<16x128xf32>
    %cst_51 = arith.constant 0.000000e+00 : f32
    %140 = vector.broadcast %cst_51 : f32 to vector<16x128xf32>
    %141 = arith.cmpf olt, %111, %140 : vector<16x128xf32>
    %cst_52 = arith.constant 0.000000e+00 : f32
    %142 = vector.broadcast %cst_52 : f32 to vector<16x128xf32>
    %143 = arith.subf %142, %139 : vector<16x128xf32>
    %144 = arith.select %141, %143, %139 : vector<16x128xi1>, vector<16x128xf32>
    %cst_53 = arith.constant 1.000000e+00 : f32
    %145 = vector.broadcast %cst_53 : f32 to vector<16x128xf32>
    %146 = arith.addf %145, %144 : vector<16x128xf32>
    %147 = arith.mulf %109, %146 : vector<16x128xf32>
    %148 = arith.truncf %147 : vector<16x128xf32> to vector<16x128xbf16>
    %cst_54 = arith.constant dense<0.000000e+00> : vector<16x128xf32>
    %149 = tpu.matmul %148, %18, %cst_54 {dimension_numbers = #tpu.dot_dimension_numbers<[1], [0], [0], [1], [0, 0, 1, 1], [], []>} : vector<16x128xbf16>, vector<128x128xbf16>, vector<16x128xf32> -> vector<16x128xf32>
    %150 = vector.broadcast %6 : vector<1x128xf32> to vector<16x128xf32>
    %151 = arith.addf %149, %150 : vector<16x128xf32>
    %152 = arith.addf %151, %107 : vector<16x128xf32>
    %cst_55 = arith.constant dense<0.000000e+00> : vector<16xf32>
    %153 = vector.multi_reduction <add>, %152, %cst_55 [1] : vector<16x128xf32> to vector<16xf32>
    %154 = vector.shape_cast %153 : vector<16xf32> to vector<16x1xf32>
    %cst_56 = arith.constant 1.280000e+02 : f32
    %155 = vector.broadcast %cst_56 : f32 to vector<16x1xf32>
    %156 = arith.divf %154, %155 : vector<16x1xf32>
    %157 = vector.broadcast %156 : vector<16x1xf32> to vector<16x128xf32>
    %158 = arith.subf %152, %157 : vector<16x128xf32>
    %159 = arith.mulf %158, %158 : vector<16x128xf32>
    %cst_57 = arith.constant dense<0.000000e+00> : vector<16xf32>
    %160 = vector.multi_reduction <add>, %159, %cst_57 [1] : vector<16x128xf32> to vector<16xf32>
    %161 = vector.shape_cast %160 : vector<16xf32> to vector<16x1xf32>
    %cst_58 = arith.constant 1.280000e+02 : f32
    %162 = vector.broadcast %cst_58 : f32 to vector<16x1xf32>
    %163 = arith.divf %161, %162 : vector<16x1xf32>
    %164 = vector.broadcast %156 : vector<16x1xf32> to vector<16x128xf32>
    %165 = arith.subf %152, %164 : vector<16x128xf32>
    %cst_59 = arith.constant 9.99999974E-6 : f32
    %166 = vector.broadcast %cst_59 : f32 to vector<16x1xf32>
    %167 = arith.addf %163, %166 : vector<16x1xf32>
    %168 = math.rsqrt %167 : vector<16x1xf32>
    %169 = vector.broadcast %168 : vector<16x1xf32> to vector<16x128xf32>
    %170 = arith.mulf %165, %169 : vector<16x128xf32>
    %171 = vector.broadcast %7 : vector<1x128xf32> to vector<16x128xf32>
    %172 = arith.mulf %170, %171 : vector<16x128xf32>
    %173 = vector.broadcast %8 : vector<1x128xf32> to vector<16x128xf32>
    %174 = arith.addf %172, %173 : vector<16x128xf32>
    %cst_60 = arith.constant 0.000000e+00 : f32
    %175 = vector.broadcast %cst_60 : f32 to vector<16x128xf32>
    %176 = arith.maximumf %174, %175 : vector<16x128xf32>
    %177 = tpu.concatenate %98, %176 in 1 : vector<16x128xf32>, vector<16x128xf32> -> vector<16x256xf32>
    %178 = arith.truncf %177 : vector<16x256xf32> to vector<16x256xbf16>
    %cst_61 = arith.constant dense<0.000000e+00> : vector<16x128xf32>
    %179 = tpu.matmul %178, %19, %cst_61 {dimension_numbers = #tpu.dot_dimension_numbers<[1], [0], [0], [1], [0, 0, 1, 1], [], []>} : vector<16x256xbf16>, vector<256x128xbf16>, vector<16x128xf32> -> vector<16x128xf32>
    %180 = vector.broadcast %9 : vector<1x128xf32> to vector<16x128xf32>
    %181 = arith.addf %179, %180 : vector<16x128xf32>
    %cst_62 = arith.constant dense<0.000000e+00> : vector<128xf32>
    %182 = vector.multi_reduction <add>, %181, %cst_62 [0] : vector<16x128xf32> to vector<128xf32>
    %183 = vector.shape_cast %182 : vector<128xf32> to vector<1x128xf32>
    %cst_63 = arith.constant 1.600000e+01 : f32
    %184 = vector.broadcast %cst_63 : f32 to vector<1x128xf32>
    %185 = arith.divf %183, %184 : vector<1x128xf32>
    %186 = vector.broadcast %185 : vector<1x128xf32> to vector<16x128xf32>
    %187 = arith.subf %181, %186 : vector<16x128xf32>
    %188 = arith.mulf %187, %187 : vector<16x128xf32>
    %cst_64 = arith.constant dense<0.000000e+00> : vector<128xf32>
    %189 = vector.multi_reduction <add>, %188, %cst_64 [0] : vector<16x128xf32> to vector<128xf32>
    %190 = vector.shape_cast %189 : vector<128xf32> to vector<1x128xf32>
    %cst_65 = arith.constant 1.600000e+01 : f32
    %191 = vector.broadcast %cst_65 : f32 to vector<1x128xf32>
    %192 = arith.divf %190, %191 : vector<1x128xf32>
    %193 = vector.broadcast %185 : vector<1x128xf32> to vector<16x128xf32>
    %194 = arith.subf %181, %193 : vector<16x128xf32>
    %cst_66 = arith.constant 9.99999974E-6 : f32
    %195 = vector.broadcast %cst_66 : f32 to vector<1x128xf32>
    %196 = arith.addf %192, %195 : vector<1x128xf32>
    %197 = math.rsqrt %196 : vector<1x128xf32>
    %198 = vector.broadcast %197 : vector<1x128xf32> to vector<16x128xf32>
    %199 = arith.mulf %194, %198 : vector<16x128xf32>
    %200 = vector.broadcast %10 : vector<1x128xf32> to vector<16x128xf32>
    %201 = arith.mulf %199, %200 : vector<16x128xf32>
    %202 = vector.broadcast %11 : vector<1x128xf32> to vector<16x128xf32>
    %203 = arith.addf %201, %202 : vector<16x128xf32>
    %cst_67 = arith.constant 0.000000e+00 : f32
    %204 = vector.broadcast %cst_67 : f32 to vector<16x128xf32>
    %205 = arith.maximumf %203, %204 : vector<16x128xf32>
    %206 = arith.truncf %205 : vector<16x128xf32> to vector<16x128xbf16>
    %cst_68 = arith.constant dense<0.000000e+00> : vector<16x128xf32>
    %207 = tpu.matmul %206, %20, %cst_68 {dimension_numbers = #tpu.dot_dimension_numbers<[1], [0], [0], [1], [0, 0, 1, 1], [], []>} : vector<16x128xbf16>, vector<128x128xbf16>, vector<16x128xf32> -> vector<16x128xf32>
    %208 = vector.broadcast %12 : vector<1x128xf32> to vector<16x128xf32>
    %209 = arith.addf %207, %208 : vector<16x128xf32>
    %cst_69 = arith.constant dense<0.000000e+00> : vector<128xf32>
    %210 = vector.multi_reduction <add>, %209, %cst_69 [0] : vector<16x128xf32> to vector<128xf32>
    %211 = vector.shape_cast %210 : vector<128xf32> to vector<1x128xf32>
    %cst_70 = arith.constant 1.600000e+01 : f32
    %212 = vector.broadcast %cst_70 : f32 to vector<1x128xf32>
    %213 = arith.divf %211, %212 : vector<1x128xf32>
    %214 = vector.broadcast %213 : vector<1x128xf32> to vector<16x128xf32>
    %215 = arith.subf %209, %214 : vector<16x128xf32>
    %216 = arith.mulf %215, %215 : vector<16x128xf32>
    %cst_71 = arith.constant dense<0.000000e+00> : vector<128xf32>
    %217 = vector.multi_reduction <add>, %216, %cst_71 [0] : vector<16x128xf32> to vector<128xf32>
    %218 = vector.shape_cast %217 : vector<128xf32> to vector<1x128xf32>
    %cst_72 = arith.constant 1.600000e+01 : f32
    %219 = vector.broadcast %cst_72 : f32 to vector<1x128xf32>
    %220 = arith.divf %218, %219 : vector<1x128xf32>
    %221 = vector.broadcast %213 : vector<1x128xf32> to vector<16x128xf32>
    %222 = arith.subf %209, %221 : vector<16x128xf32>
    %cst_73 = arith.constant 9.99999974E-6 : f32
    %223 = vector.broadcast %cst_73 : f32 to vector<1x128xf32>
    %224 = arith.addf %220, %223 : vector<1x128xf32>
    %225 = math.rsqrt %224 : vector<1x128xf32>
    %226 = vector.broadcast %225 : vector<1x128xf32> to vector<16x128xf32>
    %227 = arith.mulf %222, %226 : vector<16x128xf32>
    %228 = vector.broadcast %13 : vector<1x128xf32> to vector<16x128xf32>
    %229 = arith.mulf %227, %228 : vector<16x128xf32>
    %230 = vector.broadcast %14 : vector<1x128xf32> to vector<16x128xf32>
    %231 = arith.addf %229, %230 : vector<16x128xf32>
    %c0_74 = arith.constant 0 : index
    %c0_75 = arith.constant 0 : index
    %232 = vector.load %arg5[%c0_74, %c0_75] : memref<16x128xf32, #tpu.memory_space<vmem>>, vector<16x128xf32>
    tpu.vector_store %arg5[%c0_74, %c0_75], %231 {strides = array<i32>} : memref<16x128xf32, #tpu.memory_space<vmem>>, vector<16x128xf32>,
    return
  }
}

</mosaic_0001>

<bundles_post_ra>
// kernel: encoder_forward.1
= control target key start
LH: loop header
LB: loop body
LE: loop exit
PB: predicated region body
PF: predicated region fallthrough
CT: control target
= control target key end

     0   :  { %10 = vsyncpa [#allocation3], 0  ;;  %s2149_s0 = inlined_call_operand.hbm [shape: f32[16,256], index: 0, kind: input, shape index: {}]   ;;  %s2150_s1 = inlined_call_operand.hbm [shape: f32[16,320], index: 1, kind: input, shape index: {}]   ;;  %s2151_s2 = inlined_call_operand.hbm [shape: bf16[576,128], index: 2, kind: input, shape index: {}]   ;;  %s2152_s3 = inlined_call_operand.hbm [shape: bf16[640,128], index: 3, kind: input, shape index: {}]   ;;  %s2153_s4 = inlined_call_operand.hbm [shape: f32[14,128], index: 4, kind: input, shape index: {}]   ;;  %s2154_s5 = inlined_call_operand.hbm [shape: f32[16,128], index: 5, kind: output, shape index: {}]  }
   0x1   :  { %11 = vsyncpa [#allocation6], 0 }
   0x2   :  { %12 = vsyncpa [#allocation9], 0 }
   0x3   :  { %13 = vsyncpa [#allocation4], 0  ;;  %s1883_s18 = smov [#allocation5]   ;;  %s1743_s22 = scalar_lea.hbm %s2150_s1, 768 }
   0x4   :  { %s31_s19 = sshll.u32 %s1883_s18, 4  ;;  %p1744_p0 = scmp.ne.s32.totalorder %s2150_s1, %s1743_s22  ;;  %s32_s19 = int_to_ptr.vmem [resolvable:$true] %s31_s19 }
   0x5   :  { %p1747_p1 = scmp.lt.u32.totalorder %s1743_s22, %s2150_s1 }
   0x7   :  { %p1749_p2 = pnand %p1747_p1, %p1744_p0 }
   0x9   :  { %1752 = shalt.err (!%p1749_p2)
}
   0xa   :  { %s1753_s27 = scalar_lea.vmem %s32_s19, 768  ;;  %p1758_p4 = scmp.lt.s32.totalorder %s32_s19, %s32_s19 }
   0xb   :  { %p1754_p3 = scmp.ne.s32.totalorder %s32_s19, %s1753_s27  ;;  %p1759_p5 = scmp.lt.s32.totalorder %s1753_s27, %s1753_s27 }
   0xd   :  { %p1760_p6 = por %p1759_p5, %p1758_p4 }
   0xf   :  { %p1761_p7 = pnand %p1760_p6, %p1754_p3 }
  0x11   :  { %1764 = shalt.err (!%p1761_p7)
}
  0x12   :  { %s1884_s28 = smov 384   ;;  %s1885_s29 = smov 24  }
  0x13   :  { %37 = dma.hbm_to_vmem [thread:$0]  %s2150_s1, 768, %s32_s19, [#allocation6], %s1884_s28, %s1884_s28, %s1885_s29  }
  0x14   :  { %s1886_s7 = smov [#allocation8]   ;;  %s1887_s9 = smov [#allocation2]  }
  0x15   :  { %s55_s8 = sshll.u32 %s1886_s7, 4  ;;  %s19_s10 = sshll.u32 %s1887_s9, 4  ;;  %s56_s8 = int_to_ptr.vmem [resolvable:$true] %s55_s8  ;;  %s20_s10 = int_to_ptr.vmem [resolvable:$true] %s19_s10 }
  0x16   :  { %s1765_s13 = scalar_lea.hbm %s2152_s3, 5120 }
  0x17   :  { %p1766_p8 = scmp.ne.s32.totalorder %s2152_s3, %s1765_s13  ;;  %p1769_p9 = scmp.lt.u32.totalorder %s1765_s13, %s2152_s3 }
  0x19   :  { %p1771_p10 = pnand %p1769_p9, %p1766_p8 }
  0x1b   :  { %1774 = shalt.err (!%p1771_p10)
}
  0x1c   :  { %s1775_s1 = scalar_lea.vmem %s56_s8, 5120  ;;  %p1780_p12 = scmp.lt.s32.totalorder %s56_s8, %s56_s8 }
  0x1d   :  { %p1776_p11 = scmp.ne.s32.totalorder %s56_s8, %s1775_s1  ;;  %p1781_p13 = scmp.lt.s32.totalorder %s1775_s1, %s1775_s1 }
  0x1f   :  { %p1782_p0 = por %p1781_p13, %p1780_p12 }
  0x21   :  { %p1783_p1 = pnand %p1782_p0, %p1776_p11 }
  0x23   :  { %1786 = shalt.err (!%p1783_p1)
}
  0x24   :  { %s1888_s18 = smov 64   ;;  %s1889_s19 = smov 4  }
  0x25   :  { %61 = dma.hbm_to_vmem [thread:$0]  %s2152_s3, 5120, %s56_s8, [#allocation9], %s1888_s18, %s1888_s18, %s1889_s19  }
  0x26   :  { %s1787_s24 = scalar_lea.hbm %s2149_s0, 512 }
  0x27   :  { %p1788_p2 = scmp.ne.s32.totalorder %s2149_s0, %s1787_s24  ;;  %p1791_p3 = scmp.lt.u32.totalorder %s1787_s24, %s2149_s0 }
  0x29   :  { %p1793_p4 = pnand %p1791_p3, %p1788_p2 }
  0x2b   :  { %1796 = shalt.err (!%p1793_p4)
}
  0x2c   :  { %s1797_s29 = scalar_lea.vmem %s20_s10, 512  ;;  %p1802_p6 = scmp.lt.s32.totalorder %s20_s10, %s20_s10 }
  0x2d   :  { %p1798_p5 = scmp.ne.s32.totalorder %s20_s10, %s1797_s29  ;;  %p1803_p7 = scmp.lt.s32.totalorder %s1797_s29, %s1797_s29 }
  0x2f   :  { %p1804_p8 = por %p1803_p7, %p1802_p6 }
  0x31   :  { %p1805_p9 = pnand %p1804_p8, %p1798_p5 }
  0x33   :  { %1808 = shalt.err (!%p1805_p9)
}
  0x34   :  { %s1890_s3 = smov 256   ;;  %s1891_s30 = smov 16  }
  0x35   :  { %25 = dma.hbm_to_vmem [thread:$0]  %s2149_s0, 512, %s20_s10, [#allocation3], %s1890_s3, %s1890_s3, %s1891_s30  }
  0x36   :  { %s1892_s8 = smov [#allocation7]   ;;  %s1893_s11 = smov [#allocation10]  }
  0x37   :  { %s43_s9 = sshll.u32 %s1892_s8, 4  ;;  %s67_s12 = sshll.u32 %s1893_s11, 4  ;;  %s44_s9 = int_to_ptr.vmem [resolvable:$true] %s43_s9  ;;  %s68_s12 = int_to_ptr.vmem [resolvable:$true] %s67_s12 }
  0x38   :  { %s1809_s15 = scalar_lea.hbm %s2151_s2, 4608 }
  0x39   :  { %p1810_p10 = scmp.ne.s32.totalorder %s2151_s2, %s1809_s15  ;;  %p1813_p11 = scmp.lt.u32.totalorder %s1809_s15, %s2151_s2 }
  0x3b   :  { %p1815_p12 = pnand %p1813_p11, %p1810_p10 }
  0x3d   :  { %1818 = shalt.err (!%p1815_p12)
}
  0x3e   :  { %s1819_s0 = scalar_lea.vmem %s44_s9, 4608  ;;  %p1824_p0 = scmp.lt.s32.totalorder %s44_s9, %s44_s9 }
  0x3f   :  { %p1820_p13 = scmp.ne.s32.totalorder %s44_s9, %s1819_s0  ;;  %p1825_p1 = scmp.lt.s32.totalorder %s1819_s0, %s1819_s0 }
  0x41   :  { %p1826_p2 = por %p1825_p1, %p1824_p0 }
  0x43   :  { %p1827_p3 = pnand %p1826_p2, %p1820_p13 }
  0x45   :  { %1830 = shalt.err (!%p1827_p3)
}
  0x46   :  { %49 = dma.hbm_to_vmem [thread:$0]  %s2151_s2, 4608, %s44_s9, [#allocation6], %s1888_s18, %s1888_s18, %s1889_s19  }
  0x47   :  { %s1831_s24 = scalar_lea.hbm %s2153_s4, 256 }
  0x48   :  { %p1832_p4 = scmp.ne.s32.totalorder %s2153_s4, %s1831_s24  ;;  %p1835_p5 = scmp.lt.u32.totalorder %s1831_s24, %s2153_s4 }
  0x4a   :  { %p1837_p6 = pnand %p1835_p5, %p1832_p4 }
  0x4c   :  { %1840 = shalt.err (!%p1837_p6)
}
  0x4d   :  { %s1841_s29 = scalar_lea.vmem %s68_s12, 256  ;;  %p1846_p8 = scmp.lt.s32.totalorder %s68_s12, %s68_s12 }
  0x4e   :  { %p1842_p7 = scmp.ne.s32.totalorder %s68_s12, %s1841_s29  ;;  %p1847_p9 = scmp.lt.s32.totalorder %s1841_s29, %s1841_s29 }
  0x50   :  { %p1848_p10 = por %p1847_p9, %p1846_p8 }
  0x52   :  { %p1849_p11 = pnand %p1848_p10, %p1842_p7 }
  0x54   :  { %1852 = shalt.err (!%p1849_p11)
}
  0x55   :  { %s1894_s2 = smov 128   ;;  %s1895_s18 = smov 8  }
  0x56   :  { %73 = dma.hbm_to_vmem [thread:$0]  %s2153_s4, 256, %s68_s12, [#allocation9], %s1894_s2, %s1894_s2, %s1895_s18  }
  0x57   :  { %1875 = dma.done.wait [#allocation3], 512  }
  0x58   :  { %1876 = vsyncadd [#allocation3], 4294966784 }
  0x59   :  { %1877 = dma.done.wait [#allocation6], 5376  }
  0x5a   :  { %1878 = vsyncadd [#allocation6], 4294961920 }
  0x5b   :  { %1879 = dma.done.wait [#allocation9], 5376  }
  0x5c   :  { %1880 = vsyncadd [#allocation9], 4294961920  ;;  %v1619_v0 = vld [vmem:[#allocation7 + $0x40] sm:$0xff]   ;;  %v1621_v2 = vld [vmem:[#allocation7 + $0x48] sm:$0xff]   ;;  %v1896_v40 = vmov 0.0   ;;  %vm1897_vm0 = vmmov 0  }
  0x5d   :  { %v1620_v1 = vld [vmem:[#allocation7] sm:$0xff]   ;;  %1433 = vmatprep.subr.bf16.mxu0 %v1619_v0  ;;  %v1622_v3 = vld [vmem:[#allocation7 + $0x8] sm:$0xff]   ;;  %v1623_v4 = vld [vmem:[#allocation7 + $0x50] sm:$0xff]   ;;  %1531 = vmatprep.subr.bf16.mxu1 %v1896_v40  ;;  %vm751_vm3 = vcmask 523264   ;;  %s1898_s4 = smov [#allocation11]  }
  0x5e   :  { %1434 = vmatpush3.bf16.msra.mxu0 %v1620_v1  ;;  %v1624_v5 = vld [vmem:[#allocation7 + $0x10] sm:$0xff]   ;;  %v1625_v6 = vld [vmem:[#allocation7 + $0x58] sm:$0xff]   ;;  %v1627_v8 = vld [vmem:[#allocation7 + $0x60] sm:$0xff]   ;;  %1547 = vmatprep.mubr.msk.bf16.mxu1 %vm1897_vm0, %v1896_v40  ;;  %s1342_s30 = sshll.u32 %s1898_s4, 4  ;;  %s1343_s30 = int_to_ptr.vmem [resolvable:$true] %s1342_s30 }
  0x5f   :  { %1435 = vmatprep.subr.bf16.mxu0 %v1621_v2  ;;  %v1626_v7 = vld [vmem:[#allocation7 + $0x18] sm:$0xff]   ;;  %v1628_v9 = vld [vmem:[#allocation7 + $0x20] sm:$0xff]   ;;  %v1629_v10 = vld [vmem:[#allocation7 + $0x68] sm:$0xff]   ;;  %s1853_s6 = scalar_lea.vmem %s1343_s30, 256  ;;  %p1858_p13 = scmp.lt.s32.totalorder %s1343_s30, %s1343_s30 }
  0x60   :  { %v245_v11 = vld [vmem:[#allocation2 + $0x8] sm:$0xff]  ;;  %v247_v12 = vld [vmem:[#allocation2 + $0x18] sm:$0xff]  ;;  %v244_v13 = vld [vmem:[#allocation2] sm:$0xff]  ;;  %p1854_p12 = scmp.ne.s32.totalorder %s1343_s30, %s1853_s6  ;;  %p1859_p0 = scmp.lt.s32.totalorder %s1853_s6, %s1853_s6 }
  0x61   :  { %v249_v14 = vmul.f32 %v245_v11, %v245_v11  ;;  %v251_v15 = vmul.f32 %v247_v12, %v247_v12  ;;  %v246_v16 = vld [vmem:[#allocation2 + $0x10] sm:$0xff]  ;;  %v248_v17 = vmul.f32 %v244_v13, %v244_v13  ;;  %v1630_v19 = vld [vmem:[#allocation7 + $0x28] sm:$0xff]   ;;  %v1631_v23 = vld [vmem:[#allocation7 + $0x70] sm:$0xff]  }
  0x62   :  { %1436 = vmatpush3.bf16.msra.mxu0 %v1622_v3  ;;  %v250_v18 = vmul.f32 %v246_v16, %v246_v16  ;;  %v1632_v25 = vld [vmem:[#allocation7 + $0x30] sm:$0xff]   ;;  %v1633_v29 = vld [vmem:[#allocation7 + $0x78] sm:$0xff]   ;;  %v1635_v38 = vld [vmem:[#allocation8] sm:$0xff]   ;;  %p1860_p1 = por %p1859_p0, %p1858_p13 }
  0x63   :  { %1437 = vmatprep.subr.bf16.mxu0 %v1623_v4  ;;  %v253_v20 = vmul.f32 -50.0, %v249_v14  ;;  %v255_v21 = vmul.f32 -50.0, %v251_v15  ;;  %v252_v22 = vmul.f32 -50.0, %v248_v17  ;;  %v1634_v31 = vld [vmem:[#allocation7 + $0x38] sm:$0xff]   ;;  %v1637_v39 = vld [vmem:[#allocation7 + $0xc0] sm:$0xff]   ;;  %v1640_v42 = vld [vmem:[#allocation7 + $0xc8] sm:$0xff]   ;;  %1532 = vmatpush3.bf16.msra.mxu1 %v1635_v38 }
  0x64   :  { %v254_v24 = vmul.f32 -50.0, %v250_v18  ;;  %v1639_v41 = vld [vmem:[#allocation7 + $0x80] sm:$0xff]   ;;  %v1636_v43 = vld [vmem:[#allocation8 + $0x8] sm:$0xff]   ;;  %1533 = vmatprep.subr.bf16.mxu1 %v1896_v40  ;;  %v1643_v45 = vld [vmem:[#allocation7 + $0xd0] sm:$0xff]   ;;  %p1861_p2 = pnand %p1860_p1, %p1854_p12 }
  0x65   :  { %v258_v26 = vmul.f32 1.442695, %v253_v20  ;;  %v262_v27 = vmul.f32 1.442695, %v255_v21  ;;  %v256_v28 = vmul.f32 1.442695, %v252_v22  ;;  %v266_v21 = vlaneseq }
  0x66   :  { %1438 = vmatpush3.bf16.msra.mxu0 %v1624_v5  ;;  %v260_v30 = vmul.f32 1.442695, %v254_v24  ;;  %v1642_v44 = vld [vmem:[#allocation7 + $0x88] sm:$0xff]   ;;  %v1638_v46 = vld [vmem:[#allocation8 + $0x10] sm:$0xff]   ;;  %v1646_v48 = vld [vmem:[#allocation7 + $0xd8] sm:$0xff]  }
  0x67   :  { %1439 = vmatprep.subr.bf16.mxu0 %v1625_v6  ;;  %1695 = vpow2.f32 %v258_v26  ;;  %1534 = vmatpush3.bf16.msra.mxu1 %v1636_v43  ;;  %v1645_v47 = vld [vmem:[#allocation7 + $0x90] sm:$0xff]   ;;  %v1641_v49 = vld [vmem:[#allocation8 + $0x18] sm:$0xff]   ;;  %v1649_v51 = vld [vmem:[#allocation7 + $0xe0] sm:$0xff]   ;;  %v2009_v22 = vshrl.u32 %v266_v21, 7 }
  0x68   :  { %1697 = vpow2.f32 %v262_v27  ;;  %1535 = vmatprep.subr.bf16.mxu1 %v1896_v40  ;;  %v1648_v50 = vld [vmem:[#allocation7 + $0x98] sm:$0xff]   ;;  %v1644_v52 = vld [vmem:[#allocation8 + $0x20] sm:$0xff]   ;;  %v1652_v54 = vld [vmem:[#allocation7 + $0xe8] sm:$0xff]  }
  0x69   :  { %1699 = vpow2.f32 %v256_v28  ;;  %v1651_v53 = vld [vmem:[#allocation7 + $0xa0] sm:$0xff]   ;;  %v1647_v55 = vld [vmem:[#allocation8 + $0x28] sm:$0xff]   ;;  %v1655_v57 = vld [vmem:[#allocation7 + $0xf0] sm:$0xff]  }
  0x6a   :  { %1440 = vmatpush3.bf16.msra.mxu0 %v1626_v7  ;;  %1701 = vpow2.f32 %v260_v30  ;;  %v1654_v56 = vld [vmem:[#allocation7 + $0xa8] sm:$0xff]   ;;  %v1650_v58 = vld [vmem:[#allocation8 + $0x30] sm:$0xff]   ;;  %v1653_v59 = vld [vmem:[#allocation8 + $0x38] sm:$0xff]  }
  0x6b   :  { %1441 = vmatprep.subr.bf16.mxu0 %v1627_v8  ;;  %1536 = vmatpush3.bf16.msra.mxu1 %v1638_v46  ;;  %v595_v60 = vld [vmem:[#allocation5 + $0x8] sm:$0xff]  ;;  %v598_v61 = vld [vmem:[#allocation5 + $0x20] sm:$0xff]  ;;  %v597_v1 = vld [vmem:[#allocation5 + $0x18] sm:$0xff] }
  0x6c   :  { %1537 = vmatprep.subr.bf16.mxu1 %v1896_v40  ;;  %v601_v62 = vmul.f32 %v595_v60, %v595_v60  ;;  %v604_v63 = vmul.f32 %v598_v61, %v598_v61  ;;  %v594_v0 = vld [vmem:[#allocation5] sm:$0xff]  ;;  %v603_v3 = vmul.f32 %v597_v1, %v597_v1  ;;  %v1658_v13 = vld [vmem:[#allocation7 + $0xf8] sm:$0xff]   ;;  %v2012_v24 = vld [vmem:[#allocation10] sm:$0xff] }
  0x6d   :  { %v600_v2 = vmul.f32 %v594_v0, %v594_v0  ;;  %v1656_v12 = vld [vmem:[#allocation7 + $0xb0] sm:$0xff]   ;;  %v1659_v14 = vld [vmem:[#allocation7 + $0xb8] sm:$0xff]  }
  0x6e   :  { %1442 = vmatpush3.bf16.msra.mxu0 %v1628_v9  ;;  %v607_v4 = vmul.f32 -50.0, %v601_v62  ;;  %v610_v5 = vmul.f32 -50.0, %v604_v63  ;;  %v609_v7 = vmul.f32 -50.0, %v603_v3 }
  0x6f   :  { %1443 = vmatprep.subr.bf16.mxu0 %v1629_v10  ;;  %1538 = vmatpush3.bf16.msra.mxu1 %v1641_v49  ;;  %v606_v6 = vmul.f32 -50.0, %v600_v2 }
  0x70   :  { %1539 = vmatprep.subr.bf16.mxu1 %v1896_v40  ;;  %v614_v8 = vmul.f32 1.442695, %v607_v4  ;;  %v620_v9 = vmul.f32 1.442695, %v610_v5  ;;  %v618_v11 = vmul.f32 1.442695, %v609_v7 }
  0x71   :  { %v1696_v32 = vpop.eup %1695  ;;  %v612_v10 = vmul.f32 1.442695, %v606_v6  ;;  %v596_v5 = vld [vmem:[#allocation5 + $0x10] sm:$0xff]  ;;  %v599_v7 = vld [vmem:[#allocation5 + $0x28] sm:$0xff] }
  0x72   :  { %1444 = vmatpush3.bf16.msra.mxu0 %v1630_v19  ;;  %v1698_v33 = vpop.eup %1697  ;;  %1703 = vpow2.f32 %v614_v8 }
  0x73   :  { %1445 = vmatprep.subr.bf16.mxu0 %v1631_v23  ;;  %v1700_v34 = vpop.eup %1699  ;;  %v265_v35 = vpack.c.bf16 %v1698_v33, %v1696_v32  ;;  %1540 = vmatpush3.bf16.msra.mxu1 %v1644_v52  ;;  %1705 = vpow2.f32 %v620_v9  ;;  %v268_v23 = vsub.s32 0, %v2009_v22 }
  0x74   :  { %v1702_v36 = vpop.eup %1701  ;;  %1541 = vmatprep.subr.bf16.mxu1 %v1896_v40  ;;  %1707 = vpow2.f32 %v612_v10 }
  0x75   :  { %398 = vmatprep.mubr.bf16.mxu0 %v265_v35  ;;  %v264_v37 = vpack.c.bf16 %v1702_v36, %v1700_v34  ;;  %1709 = vpow2.f32 %v618_v11  ;;  %v269_v26 = vrot.slane %v2012_v24, %v268_v23  ;;  %v602_v11 = vmul.f32 %v596_v5, %v596_v5 }
  0x76   :  { %1446 = vmatpush3.bf16.msra.mxu0 %v1632_v25 }
  0x77   :  { %1447 = vmatprep.subr.bf16.mxu0 %v1633_v29  ;;  %1542 = vmatpush3.bf16.msra.mxu1 %v1647_v55 }
  0x78   :  { %1543 = vmatprep.subr.bf16.mxu1 %v1896_v40 }
  0x7a   :  { %1448 = vmatpush3.bf16.msra.mxu0 %v1634_v31 }
  0x7b   :  { %1464 = vmatprep.subr.bf16.mxu0 %v1637_v39  ;;  %1544 = vmatpush3.bf16.msra.mxu1 %v1650_v58 }
  0x7c   :  { %1545 = vmatprep.subr.bf16.mxu1 %v1896_v40  ;;  %v1704_v15 = vpop.eup %1703 }
  0x7d   :  { %399 = vmatmul.mubr.bf16.vlgmr.msra.gmra.mrb[0].mxu0 %v264_v37  ;;  %v1706_v16 = vpop.eup %1705 }
  0x7e   :  { %1465 = vmatpush3.bf16.msra.mxu0 %v1639_v41  ;;  %v1708_v17 = vpop.eup %1707  ;;  %v625_v18 = vpack.c.bf16 %v1706_v16, %v1704_v15 }
  0x7f   :  { %1466 = vmatprep.subr.bf16.mxu0 %v1640_v42  ;;  %1546 = vmatpush3.bf16.msra.mxu1 %v1653_v59  ;;  %v1710_v19 = vpop.eup %1709 }
  0x80   :  { %1551 = vmatprep.subr.bf16.mxu1 %v1896_v40  ;;  %787 = vmatprep.mubr.bf16.mxu0 %v625_v18  ;;  %v624_v20 = vpack.c.bf16 %v1710_v19, %v1708_v17  ;;  %v608_v17 = vmul.f32 -50.0, %v602_v11 }
  0x82   :  { %1467 = vmatpush3.bf16.msra.mxu0 %v1642_v44 }
  0x83   :  { %1468 = vmatprep.subr.bf16.mxu0 %v1643_v45 }
  0x86   :  { %1469 = vmatpush3.bf16.msra.mxu0 %v1645_v47 }
  0x87   :  { %1470 = vmatprep.subr.bf16.mxu0 %v1646_v48 }
  0x8a   :  { %1471 = vmatpush3.bf16.msra.mxu0 %v1648_v50 }
  0x8b   :  { %1472 = vmatprep.subr.bf16.mxu0 %v1649_v51 }
  0x8e   :  { %1473 = vmatpush3.bf16.msra.mxu0 %v1651_v53 }
  0x8f   :  { %1474 = vmatprep.subr.bf16.mxu0 %v1652_v54 }
  0x92   :  { %1475 = vmatpush3.bf16.msra.mxu0 %v1654_v56 }
  0x93   :  { %1476 = vmatprep.subr.bf16.mxu0 %v1655_v57 }
  0x96   :  { %1477 = vmatpush3.bf16.msra.mxu0 %v1656_v12 }
  0x97   :  { %1478 = vmatprep.subr.bf16.mxu0 %v1658_v13  ;;  %v605_v13 = vmul.f32 %v599_v7, %v599_v7 }
  0x99   :  { %v611_v19 = vmul.f32 -50.0, %v605_v13 }
  0x9a   :  { %1479 = vmatpush3.bf16.msra.mxu0 %v1659_v14 }
  0x9d   :  { %788 = vmatmul.mubr.bf16.vlgmr.msra.gmra.mrb[4].mxu0 %v624_v20 }
 0x150   :  { %v1449_v25 = vpop.f32.mrb[0].mxu0 }
 0x151   :  { %v1450_v27 = vpop.f32.mrb[1].mxu0 }
 0x152   :  { %v1451_v28 = vadd.f32 %v1450_v27, %v1449_v25  ;;  %v1452_v29 = vpop.f32.mrb[2].mxu0 }
 0x153   :  { %v1453_v30 = vpop.f32.mrb[3].mxu0 }
 0x154   :  { %v2017_v31 = vadd.f32 %v1451_v28, %v269_v26  ;;  %v1454_v32 = vadd.f32 %v1453_v30, %v1452_v29  ;;  %v616_v28 = vmul.f32 1.442695, %v608_v17  ;;  %v622_v29 = vmul.f32 1.442695, %v611_v19 }
 0x156   :  { %v409_v33 = vmul.f32 0.70710677, %v2017_v31  ;;  %v2020_v34 = vadd.f32 %v1454_v32, %v269_v26  ;;  %v407_v25 = vmul.f32 0.5, %v2017_v31 }
 0x158   :  { %v411_v35 = vand.u32 2147483647, %v409_v33  ;;  %v410_v36 = vmul.f32 0.70710677, %v2020_v34  ;;  %vm451_vm1 = vcmp.lt.f32.partialorder %v409_v33, 0.0  ;;  %v408_v26 = vmul.f32 0.5, %v2020_v34 }
 0x159   :  { %v1660_v33 = vld [vmem:[#allocation7 + $0x108] sm:$0xff]  }
 0x15a   :  { %v413_v37 = vmul.f32 0.3275911, %v411_v35  ;;  %v412_v38 = vand.u32 2147483647, %v410_v36  ;;  %v439_v43 = vsub.f32 0.0, %v411_v35  ;;  %vm452_vm2 = vcmp.lt.f32.partialorder %v410_v36, 0.0 }
 0x15b   :  { %v1661_v36 = vld [vmem:[#allocation7 + $0x110] sm:$0xff]  }
 0x15c   :  { %v415_v39 = vadd.f32 1.0, %v413_v37  ;;  %v414_v41 = vmul.f32 0.3275911, %v412_v38  ;;  %v440_v44 = vsub.f32 0.0, %v412_v38  ;;  %v441_v46 = vmul.f32 %v439_v43, %v411_v35  ;;  %v1657_v35 = vld [vmem:[#allocation7 + $0x100] sm:$0xff]  }
 0x15e   :  { %1711 = vrcp.f32 %v415_v39  ;;  %v416_v42 = vadd.f32 1.0, %v414_v41  ;;  %v442_v49 = vmul.f32 %v440_v44, %v412_v38  ;;  %v443_v51 = vmul.f32 1.442695, %v441_v46  ;;  %v1662_v41 = vld [vmem:[#allocation7 + $0x118] sm:$0xff]  }
 0x160   :  { %1713 = vrcp.f32 %v416_v42  ;;  %v445_v55 = vmul.f32 1.442695, %v442_v49  ;;  %v1663_v49 = vld [vmem:[#allocation8 + $0x40] sm:$0xff]  }
 0x161   :  { %1715 = vpow2.f32 %v443_v51  ;;  %v1665_v51 = vld [vmem:[#allocation8 + $0x50] sm:$0xff]  }
 0x162   :  { %1717 = vpow2.f32 %v445_v55  ;;  %v1669_v55 = vld [vmem:[#allocation8 + $0x70] sm:$0xff]  }
 0x163   :  { %1719 = vpow2.f32 %v616_v28 }
 0x164   :  { %1721 = vpow2.f32 %v622_v29 }
 0x168   :  { %v1712_v45 = vpop.eup %1711 }
 0x169   :  { %v421_v47 = vmul.f32 1.0614054, %v1712_v45 }
 0x16a   :  { %v1714_v48 = vpop.eup %1713 }
 0x16b   :  { %v423_v50 = vadd.f32 -1.4531521, %v421_v47  ;;  %v422_v52 = vmul.f32 1.0614054, %v1714_v48  ;;  %v1716_v3 = vpop.eup %1715 }
 0x16c   :  { %v1718_v9 = vpop.eup %1717 }
 0x16d   :  { %v425_v53 = vmul.f32 %v1712_v45, %v423_v50  ;;  %v424_v54 = vadd.f32 -1.4531521, %v422_v52  ;;  %v1720_v38 = vpop.eup %1719  ;;  %v1664_v50 = vld [vmem:[#allocation8 + $0x48] sm:$0xff]   ;;  %v1666_v52 = vld [vmem:[#allocation8 + $0x58] sm:$0xff]  }
 0x16e   :  { %v1722_v39 = vpop.eup %1721 }
 0x16f   :  { %v427_v56 = vadd.f32 1.4214138, %v425_v53  ;;  %v426_v57 = vmul.f32 %v1714_v48, %v424_v54  ;;  %v626_v42 = vpack.c.bf16 %v1722_v39, %v1720_v38  ;;  %v1667_v53 = vld [vmem:[#allocation8 + $0x60] sm:$0xff]   ;;  %v1668_v54 = vld [vmem:[#allocation8 + $0x68] sm:$0xff]  }
 0x170   :  { %v1480_v43 = vpop.f32.mrb[4].mxu0 }
 0x171   :  { %v429_v58 = vmul.f32 %v1712_v45, %v427_v56  ;;  %v428_v59 = vadd.f32 1.4214138, %v426_v57  ;;  %v1481_v44 = vpop.f32.mrb[5].mxu0  ;;  %v1670_v56 = vld [vmem:[#allocation8 + $0x78] sm:$0xff]   ;;  %v464_v57 = vsub.s32 1, %v2009_v22 }
 0x172   :  { %v1483_v46 = vpop.f32.mrb[6].mxu0 }
 0x173   :  { %v431_v60 = vadd.f32 -0.28449672, %v429_v58  ;;  %v430_v61 = vmul.f32 %v1714_v48, %v428_v59  ;;  %v1484_v47 = vpop.f32.mrb[7].mxu0  ;;  %v465_v58 = vrot.slane %v2012_v24, %v464_v57 }
 0x175   :  { %v433_v62 = vmul.f32 %v1712_v45, %v431_v60  ;;  %v432_v63 = vadd.f32 -0.28449672, %v430_v61 }
 0x177   :  { %v435_v0 = vadd.f32 0.2548296, %v433_v62  ;;  %v434_v1 = vmul.f32 %v1714_v48, %v432_v63 }
 0x179   :  { %v437_v2 = vmul.f32 %v1712_v45, %v435_v0  ;;  %v436_v4 = vadd.f32 0.2548296, %v434_v1  ;;  %v1482_v45 = vadd.f32 %v1481_v44, %v1480_v43 }
 0x17b   :  { %v447_v6 = vmul.f32 %v1716_v3, %v437_v2  ;;  %v438_v8 = vmul.f32 %v1714_v48, %v436_v4  ;;  %v1485_v48 = vadd.f32 %v1484_v47, %v1483_v46  ;;  %v629_v2 = vsub.s32 4, %v2009_v22 }
 0x17d   :  { %v449_v10 = vsub.f32 1.0, %v447_v6  ;;  %v448_v12 = vmul.f32 %v1718_v9, %v438_v8  ;;  %v630_v4 = vrot.slane %v2012_v24, %v629_v2 }
 0x17f   :  { %v453_v14 = vsub.f32 0.0, %v449_v10  ;;  %v450_v15 = vsub.f32 1.0, %v448_v12  ;;  %v790_v5 = vadd.f32 %v1482_v45, %v630_v4 }
 0x181   :  { %v455_v16 = vsel %vm451_vm1, %v453_v14, %v449_v10  ;;  %v454_v18 = vsub.f32 0.0, %v450_v15 }
 0x182   :  { %v457_v20 = vadd.f32 1.0, %v455_v16 }
 0x183   :  { %v456_v21 = vsel %vm452_vm2, %v454_v18, %v450_v15 }
 0x184   :  { %v458_v27 = vadd.f32 1.0, %v456_v21  ;;  %v459_v30 = vmul.f32 %v457_v20, %v407_v25 }
 0x186   :  { %v460_v32 = vmul.f32 %v458_v27, %v408_v26 }
 0x188   :  { %v461_v37 = vpack.c.bf16 %v460_v32, %v459_v30 }
 0x18a   :  { %1548 = vmatmul.mubr.bf16.vlgmr.msra.gmra.mrb[0].mxu1 %v461_v37 }
 0x18b   :  { %1552 = vmatpush3.bf16.msra.mxu1 %v1657_v35  ;;  %1559 = vmatprep.mubr.msk.bf16.mxu1 %vm1897_vm0, %v1896_v40 }
 0x18c   :  { %1553 = vmatprep.subr.bf16.mxu1 %v1896_v40 }
 0x18f   :  { %1554 = vmatpush3.bf16.msra.mxu1 %v1660_v33 }
 0x190   :  { %1555 = vmatprep.subr.bf16.mxu1 %v1896_v40 }
 0x193   :  { %1556 = vmatpush3.bf16.msra.mxu1 %v1661_v36 }
 0x194   :  { %1557 = vmatprep.subr.bf16.mxu1 %v1896_v40 }
 0x197   :  { %1558 = vmatpush3.bf16.msra.mxu1 %v1662_v41 }
 0x198   :  { %1563 = vmatprep.subr.bf16.mxu1 %v1896_v40 }
 0x19a   :  { %1560 = vmatmul.mubr.msk.bf16.vlgmr.msra.gmra.mrb[4].mxu1 %vm751_vm3, %v626_v42 }
 0x19b   :  { %1579 = vmatprep.mubr.msk.bf16.mxu1 %vm1897_vm0, %v1896_v40  ;;  %1564 = vmatpush3.bf16.msra.mxu1 %v1663_v49 }
 0x19c   :  { %1565 = vmatprep.subr.bf16.mxu1 %v1896_v40 }
 0x19f   :  { %1566 = vmatpush3.bf16.msra.mxu1 %v1664_v50 }
 0x1a0   :  { %1567 = vmatprep.subr.bf16.mxu1 %v1896_v40 }
 0x1a3   :  { %1568 = vmatpush3.bf16.msra.mxu1 %v1665_v51 }
 0x1a4   :  { %1569 = vmatprep.subr.bf16.mxu1 %v1896_v40 }
 0x1a7   :  { %1570 = vmatpush3.bf16.msra.mxu1 %v1666_v52 }
 0x1a8   :  { %1571 = vmatprep.subr.bf16.mxu1 %v1896_v40 }
 0x1ab   :  { %1572 = vmatpush3.bf16.msra.mxu1 %v1667_v53 }
 0x1ac   :  { %1573 = vmatprep.subr.bf16.mxu1 %v1896_v40 }
 0x1af   :  { %1574 = vmatpush3.bf16.msra.mxu1 %v1668_v54 }
 0x1b0   :  { %1575 = vmatprep.subr.bf16.mxu1 %v1896_v40 }
 0x1b3   :  { %1576 = vmatpush3.bf16.msra.mxu1 %v1669_v55 }
 0x1b4   :  { %1577 = vmatprep.subr.bf16.mxu1 %v1896_v40 }
 0x1b7   :  { %1578 = vmatpush3.bf16.msra.mxu1 %v1670_v56 }
 0x1b8   :  { %1583 = vmatprep.subr.bf16.mxu1 %v1896_v40 }
 0x25d   :  { %v548_v59 = vpop.f32.mrb[0].mxu1 }
 0x25e   :  { %v549_v60 = vadd.f32 %v548_v59, %v465_v58  ;;  %v1549_v61 = vpop.f32.mrb[1].mxu1 }
 0x25f   :  { %v551_v62 = vpop.f32.mrb[2].mxu1 }
 0x260   :  { %v552_v63 = vadd.f32 %v551_v62, %v465_v58  ;;  %v1550_v0 = vpop.f32.mrb[3].mxu1  ;;  %v2046_v1 = vadd.f32 %v549_v60, %v2017_v31  ;;  %v793_v31 = vadd.f32 %v1485_v48, %v630_v4 }
 0x262   :  { %557 = vadd.xlane.f32.xlu1 %v2046_v1  ;;  %v2051_v3 = vadd.f32 %v552_v63, %v2020_v34 }
 0x266   :  { %559 = vadd.xlane.f32.xlu1 %v2051_v3 }
 0x26d   :  { %v830_v6 = vpop.f32.mrb[4].mxu1 }
 0x26e   :  { %v2057_v7 = vadd.f32 %v830_v6, %v790_v5  ;;  %v1561_v8 = vpop.f32.mrb[5].mxu1 }
 0x26f   :  { %v833_v9 = vpop.f32.mrb[6].mxu1 }
 0x270   :  { %v839_v10 = vmul.f32 0.70710677, %v2057_v7  ;;  %v2060_v11 = vadd.f32 %v833_v9, %v793_v31  ;;  %v1562_v12 = vpop.f32.mrb[7].mxu1  ;;  %v837_v63 = vmul.f32 0.5, %v2057_v7  ;;  %v894_v31 = vsub.s32 5, %v2009_v22 }
 0x272   :  { %v841_v34 = vand.u32 2147483647, %v839_v10  ;;  %v840_v13 = vmul.f32 0.70710677, %v2060_v11  ;;  %vm881_vm4 = vcmp.lt.f32.partialorder %v839_v10, 0.0  ;;  %v838_v0 = vmul.f32 0.5, %v2060_v11 }
 0x273   :  { %v895_v9 = vrot.slane %v2012_v24, %v894_v31 }
 0x274   :  { %v843_v14 = vmul.f32 0.3275911, %v841_v34  ;;  %v842_v15 = vand.u32 2147483647, %v840_v13  ;;  %v869_v19 = vsub.f32 0.0, %v841_v34  ;;  %vm882_vm5 = vcmp.lt.f32.partialorder %v840_v13, 0.0 }
 0x276   :  { %v845_v16 = vadd.f32 1.0, %v843_v14  ;;  %v844_v17 = vmul.f32 0.3275911, %v842_v15  ;;  %v870_v20 = vsub.f32 0.0, %v842_v15  ;;  %v871_v25 = vmul.f32 %v869_v19, %v841_v34 }
 0x278   :  { %1723 = vrcp.f32 %v845_v16  ;;  %v846_v18 = vadd.f32 1.0, %v844_v17  ;;  %v872_v29 = vmul.f32 %v870_v20, %v842_v15  ;;  %v873_v30 = vmul.f32 1.442695, %v871_v25 }
 0x27a   :  { %1725 = vrcp.f32 %v846_v18  ;;  %v875_v36 = vmul.f32 1.442695, %v872_v29 }
 0x27b   :  { %1727 = vpow2.f32 %v873_v30 }
 0x27c   :  { %1729 = vpow2.f32 %v875_v36  ;;  %v1672_v36 = vld [vmem:[#allocation8 + $0x80] sm:$0xff]  }
 0x282   :  { %v1724_v21 = vpop.eup %1723 }
 0x283   :  { %v851_v26 = vmul.f32 1.0614054, %v1724_v21 }
 0x284   :  { %v1726_v27 = vpop.eup %1725 }
 0x285   :  { %v853_v28 = vadd.f32 -1.4531521, %v851_v26  ;;  %v852_v32 = vmul.f32 1.0614054, %v1726_v27  ;;  %v1728_v49 = vpop.eup %1727 }
 0x286   :  { %v1730_v53 = vpop.eup %1729 }
 0x287   :  { %v855_v35 = vmul.f32 %v1724_v21, %v853_v28  ;;  %v854_v37 = vadd.f32 -1.4531521, %v852_v32 }
 0x289   :  { %v857_v33 = vadd.f32 1.4214138, %v855_v35  ;;  %v856_v38 = vmul.f32 %v1726_v27, %v854_v37 }
 0x28b   :  { %v859_v39 = vmul.f32 %v1724_v21, %v857_v33  ;;  %v858_v41 = vadd.f32 1.4214138, %v856_v38  ;;  %v1671_v33 = vld [vmem:[#allocation8 + $0xc0] sm:$0xff]   ;;  %v1673_v38 = vld [vmem:[#allocation8 + $0xc8] sm:$0xff]  }
 0x28c   :  { %1500 = vmatprep.subr.bf16.mxu0 %v1671_v33 }
 0x28d   :  { %v861_v42 = vadd.f32 -0.28449672, %v859_v39  ;;  %v860_v43 = vmul.f32 %v1726_v27, %v858_v41  ;;  %1501 = vmatpush3.bf16.msra.mxu0 %v1672_v36  ;;  %v1674_v39 = vld [vmem:[#allocation8 + $0x88] sm:$0xff]   ;;  %v1676_v41 = vld [vmem:[#allocation8 + $0x90] sm:$0xff]  }
 0x28e   :  { %1502 = vmatprep.subr.bf16.mxu0 %v1673_v38  ;;  %v1687_v38 = vld [vmem:[#allocation8 + $0x100] sm:$0xff]  }
 0x28f   :  { %v863_v44 = vmul.f32 %v1724_v21, %v861_v42  ;;  %v862_v45 = vadd.f32 -0.28449672, %v860_v43  ;;  %v1677_v42 = vld [vmem:[#allocation8 + $0xd8] sm:$0xff]  }
 0x290   :  { %v1678_v43 = vld [vmem:[#allocation8 + $0x98] sm:$0xff]  }
 0x291   :  { %v865_v46 = vadd.f32 0.2548296, %v863_v44  ;;  %v864_v47 = vmul.f32 %v1726_v27, %v862_v45  ;;  %1503 = vmatpush3.bf16.msra.mxu0 %v1674_v39  ;;  %v1679_v44 = vld [vmem:[#allocation8 + $0xe0] sm:$0xff]   ;;  %v1690_v39 = vld [vmem:[#allocation8 + $0x118] sm:$0xff]  }
 0x292   :  { %v1680_v45 = vld [vmem:[#allocation8 + $0xa0] sm:$0xff]  }
 0x293   :  { %v867_v48 = vmul.f32 %v1724_v21, %v865_v46  ;;  %v866_v50 = vadd.f32 0.2548296, %v864_v47  ;;  %v1681_v46 = vld [vmem:[#allocation8 + $0xe8] sm:$0xff]  }
 0x294   :  { %v1682_v47 = vld [vmem:[#allocation8 + $0xa8] sm:$0xff]  }
 0x295   :  { %v877_v51 = vmul.f32 %v1728_v49, %v867_v48  ;;  %v868_v52 = vmul.f32 %v1726_v27, %v866_v50  ;;  %v1683_v48 = vld [vmem:[#allocation8 + $0xf0] sm:$0xff]   ;;  %v1685_v50 = vld [vmem:[#allocation8 + $0xf8] sm:$0xff]  }
 0x296   :  { %v1684_v49 = vld [vmem:[#allocation8 + $0xb0] sm:$0xff]  }
 0x297   :  { %v879_v54 = vsub.f32 1.0, %v877_v51  ;;  %v878_v55 = vmul.f32 %v1730_v53, %v868_v52  ;;  %v1686_v51 = vld [vmem:[#allocation8 + $0xb8] sm:$0xff]  }
 0x299   :  { %v883_v56 = vsub.f32 0.0, %v879_v54  ;;  %v880_v58 = vsub.f32 1.0, %v878_v55 }
 0x29b   :  { %v885_v59 = vsel %vm881_vm4, %v883_v56, %v879_v54  ;;  %v884_v60 = vsub.f32 0.0, %v880_v58 }
 0x29c   :  { %v887_v61 = vadd.f32 1.0, %v885_v59 }
 0x29d   :  { %v886_v62 = vsel %vm882_vm5, %v884_v60, %v880_v58 }
 0x29e   :  { %v888_v4 = vadd.f32 1.0, %v886_v62  ;;  %v889_v5 = vmul.f32 %v887_v61, %v837_v63 }
 0x2a0   :  { %v890_v6 = vmul.f32 %v888_v4, %v838_v0  ;;  %v1011_v0 = vsub.s32 6, %v2009_v22 }
 0x2a2   :  { %v891_v8 = vpack.c.bf16 %v890_v6, %v889_v5  ;;  %v1012_v5 = vrot.slane %v2012_v24, %v1011_v0  ;;  %v1017_v6 = vsub.s32 7, %v2009_v22 }
 0x2a4   :  { %1580 = vmatmul.mubr.bf16.vlgmr.msra.gmra.mrb[8].mxu1 %v891_v8 }
 0x2a5   :  { %1599 = vmatprep.mubr.msk.bf16.mxu1 %vm1897_vm0, %v1896_v40  ;;  %1584 = vmatpush3.bf16.msra.mxu1 %v1687_v38 }
 0x2a6   :  { %1585 = vmatprep.subr.bf16.mxu1 %v1896_v40 }
 0x2ef   :  { %v558_v18 = vpop.xlane.xlu1 %557 }
 0x2f0   :  { %v562_v20 = vmul.f32 0.0078125, %v558_v18 }
 0x2f2   :  { %v2076_v28 = vsub.f32 %v2046_v1, %v562_v20 }
 0x2f3   :  { %v560_v25 = vpop.xlane.xlu1 %559 }
 0x2f4   :  { %v563_v29 = vmul.f32 0.0078125, %v560_v25  ;;  %v566_v35 = vmul.f32 %v2076_v28, %v2076_v28 }
 0x377   :  { %v978_v10 = vpop.f32.mrb[8].mxu1 }
 0x378   :  { %v979_v12 = vadd.f32 %v978_v10, %v895_v9  ;;  %v1581_v34 = vpop.f32.mrb[9].mxu1 }
 0x379   :  { %v981_v13 = vpop.f32.mrb[10].mxu1  ;;  %v1018_v34 = vrot.slane %v2012_v24, %v1017_v6 }
 0x37a   :  { %v982_v14 = vadd.f32 %v981_v13, %v895_v9  ;;  %v1582_v15 = vpop.f32.mrb[11].mxu1  ;;  %v985_v16 = vadd.f32 %v979_v12, %v2057_v7  ;;  %v582_v9 = vsub.s32 2, %v2009_v22  ;;  %v588_v13 = vsub.s32 3, %v2009_v22 }
 0x37c   :  { %987 = vadd.xlane.f32.xlu0 %v985_v16  ;;  %v986_v17 = vadd.f32 %v982_v14, %v2060_v11  ;;  %v2083_v11 = vsub.f32 %v2051_v3, %v563_v29  ;;  %v1675_v3 = vld [vmem:[#allocation8 + $0xd0] sm:$0xff]   ;;  %v583_v15 = vrot.slane %v2012_v24, %v582_v9 }
 0x37d   :  { %1504 = vmatprep.subr.bf16.mxu0 %v1675_v3  ;;  %v1691_v3 = vld [vmem:[#allocation8 + $0x120] sm:$0xff]  }
 0x37e   :  { %v567_v1 = vmul.f32 %v2083_v11, %v2083_v11  ;;  %1505 = vmatpush3.bf16.msra.mxu0 %v1676_v41  ;;  %v1692_v41 = vld [vmem:[#allocation8 + $0x128] sm:$0xff]  }
 0x37f   :  { %1506 = vmatprep.subr.bf16.mxu0 %v1677_v42  ;;  %v1693_v42 = vld [vmem:[#allocation8 + $0x130] sm:$0xff]  }
 0x380   :  { %989 = vadd.xlane.f32.xlu0 %v986_v17 }
 0x382   :  { %1507 = vmatpush3.bf16.msra.mxu0 %v1678_v43  ;;  %v1694_v43 = vld [vmem:[#allocation8 + $0x138] sm:$0xff]  }
 0x383   :  { %1508 = vmatprep.subr.bf16.mxu0 %v1679_v44  ;;  %v2114_v44 = vld [vmem:[#allocation10 + $0x8] sm:$0x3f] }
 0x386   :  { %1509 = vmatpush3.bf16.msra.mxu0 %v1680_v45 }
 0x387   :  { %1510 = vmatprep.subr.bf16.mxu0 %v1681_v46 }
 0x38a   :  { %1511 = vmatpush3.bf16.msra.mxu0 %v1682_v47  ;;  %v1028_v47 = vrot.slane %v2114_v44, %v268_v23 }
 0x38b   :  { %1512 = vmatprep.subr.bf16.mxu0 %v1683_v48 }
 0x38e   :  { %1513 = vmatpush3.bf16.msra.mxu0 %v1684_v49 }
 0x38f   :  { %1514 = vmatprep.subr.bf16.mxu0 %v1685_v50 }
 0x392   :  { %1515 = vmatpush3.bf16.msra.mxu0 %v1686_v51 }
 0x409   :  { %v988_v19 = vpop.xlane.xlu0 %987 }
 0x40a   :  { %v991_v21 = vmul.f32 0.0078125, %v988_v19 }
 0x40c   :  { %v2073_v26 = vsub.f32 %v985_v16, %v991_v21  ;;  %v589_v21 = vrot.slane %v2012_v24, %v588_v13  ;;  %v1688_v24 = vld [vmem:[#allocation8 + $0x108] sm:$0xff]  }
 0x40d   :  { %v990_v27 = vpop.xlane.xlu0 %989  ;;  %1586 = vmatpush3.bf16.msra.mxu1 %v1688_v24 }
 0x40e   :  { %v992_v30 = vmul.f32 0.0078125, %v990_v27  ;;  %v995_v7 = vmul.f32 %v2073_v26, %v2073_v26  ;;  %1587 = vmatprep.subr.bf16.mxu1 %v1896_v40 }
 0x410   :  { %v2080_v32 = vsub.f32 %v986_v17, %v992_v30  ;;  %997 = vadd.xlane.f32.xlu0 %v995_v7 }
 0x412   :  { %v996_v37 = vmul.f32 %v2080_v32, %v2080_v32 }
 0x414   :  { %568 = vadd.xlane.f32.xlu0 %v566_v35  ;;  %999 = vadd.xlane.f32.xlu1 %v996_v37 }
 0x418   :  { %570 = vadd.xlane.f32.xlu1 %v567_v1 }
 0x49d   :  { %v998_v52 = vpop.xlane.xlu0 %997 }
 0x49e   :  { %v1001_v53 = vmul.f32 0.0078125, %v998_v52 }
 0x4a0   :  { %v1003_v54 = vadd.f32 1e-05, %v1001_v53 }
 0x4a1   :  { %v1000_v55 = vpop.xlane.xlu1 %999  ;;  %v569_v56 = vpop.xlane.xlu0 %568 }
 0x4a2   :  { %1731 = vrsqrt.f32 %v1003_v54  ;;  %v1002_v58 = vmul.f32 0.0078125, %v1000_v55  ;;  %v572_v59 = vmul.f32 0.0078125, %v569_v56 }
 0x4a4   :  { %v1004_v60 = vadd.f32 1e-05, %v1002_v58  ;;  %v574_v61 = vadd.f32 1e-05, %v572_v59 }
 0x4a5   :  { %v571_v62 = vpop.xlane.xlu1 %570 }
 0x4a6   :  { %1733 = vrsqrt.f32 %v1004_v60  ;;  %v573_v63 = vmul.f32 0.0078125, %v571_v62 }
 0x4a7   :  { %1735 = vrsqrt.f32 %v574_v61 }
 0x4a8   :  { %v575_v4 = vadd.f32 1e-05, %v573_v63 }
 0x4aa   :  { %1737 = vrsqrt.f32 %v575_v4 }
 0x4ac   :  { %v1732_v8 = vpop.eup %1731 }
 0x4ad   :  { %v1007_v10 = vmul.f32 %v1732_v8, %v2073_v26 }
 0x4af   :  { %v1013_v12 = vmul.f32 %v1012_v5, %v1007_v10 }
 0x4b0   :  { %v1734_v14 = vpop.eup %1733 }
 0x4b1   :  { %v1736_v16 = vpop.eup %1735  ;;  %v1008_v17 = vmul.f32 %v1734_v14, %v2080_v32  ;;  %v1019_v20 = vadd.f32 %v1018_v34, %v1013_v12 }
 0x4b2   :  { %v578_v18 = vmul.f32 %v1736_v16, %v2076_v28  ;;  %v1194_v16 = vrot.slane %v2114_v44, %v464_v57 }
 0x4b3   :  { %v1014_v19 = vmul.f32 %v1012_v5, %v1008_v17  ;;  %v1021_v30 = vmax.f32 %v1019_v20, 0.0  ;;  %v1200_v20 = vrot.slane %v2114_v44, %v582_v9 }
 0x4b4   :  { %v1738_v25 = vpop.eup %1737  ;;  %v584_v26 = vmul.f32 %v583_v15, %v578_v18 }
 0x4b5   :  { %v579_v27 = vmul.f32 %v1738_v25, %v2083_v11  ;;  %v1020_v29 = vadd.f32 %v1018_v34, %v1014_v19  ;;  %v1689_v11 = vld [vmem:[#allocation8 + $0x110] sm:$0xff]  }
 0x4b6   :  { %v590_v37 = vadd.f32 %v589_v21, %v584_v26  ;;  %1588 = vmatpush3.bf16.msra.mxu1 %v1689_v11 }
 0x4b7   :  { %v1022_v7 = vmax.f32 %v1020_v29, 0.0  ;;  %v585_v35 = vmul.f32 %v583_v15, %v579_v27  ;;  %1589 = vmatprep.subr.bf16.mxu1 %v1896_v40 }
 0x4b8   :  { %v592_v32 = vmax.f32 %v590_v37, 0.0 }
 0x4b9   :  { %v1024_v1 = vpack.c.bf16 %v1022_v7, %v1021_v30  ;;  %v591_v33 = vadd.f32 %v589_v21, %v585_v35  ;;  %v1209_v35 = vrot.slane %v2114_v44, %v588_v13 }
 0x4ba   :  { %1590 = vmatpush3.bf16.msra.mxu1 %v1690_v39 }
 0x4bb   :  { %1157 = vmatprep.mubr.bf16.mxu0 %v1024_v1  ;;  %v593_v28 = vmax.f32 %v591_v33, 0.0  ;;  %1591 = vmatprep.subr.bf16.mxu1 %v1896_v40 }
 0x4bd   :  { %v1023_v36 = vpack.c.bf16 %v593_v28, %v592_v32 }
 0x4be   :  { %1592 = vmatpush3.bf16.msra.mxu1 %v1691_v3 }
 0x4bf   :  { %1158 = vmatmul.mubr.bf16.vlgmr.msra.gmra.mrb[8].mxu0 %v1023_v36  ;;  %1593 = vmatprep.subr.bf16.mxu1 %v1896_v40 }
 0x4c2   :  { %1594 = vmatpush3.bf16.msra.mxu1 %v1692_v41 }
 0x4c3   :  { %1595 = vmatprep.subr.bf16.mxu1 %v1896_v40 }
 0x4c6   :  { %1596 = vmatpush3.bf16.msra.mxu1 %v1693_v42 }
 0x4c7   :  { %1597 = vmatprep.subr.bf16.mxu1 %v1896_v40 }
 0x4ca   :  { %1598 = vmatpush3.bf16.msra.mxu1 %v1694_v43 }
 0x592   :  { %v1516_v45 = vpop.f32.mrb[8].mxu0 }
 0x593   :  { %v1517_v46 = vpop.f32.mrb[9].mxu0 }
 0x594   :  { %v1518_v48 = vadd.f32 %v1517_v46, %v1516_v45  ;;  %v1519_v49 = vpop.f32.mrb[10].mxu0 }
 0x595   :  { %v1520_v50 = vpop.f32.mrb[11].mxu0 }
 0x596   :  { %v1521_v51 = vadd.f32 %v1520_v50, %v1519_v49  ;;  %v1160_v52 = vadd.f32 %v1518_v48, %v1028_v47 }
 0x598   :  { %v1163_v53 = vadd.f32 %v1521_v51, %v1028_v47 }
 0x59a   :  { %v1166_v54 = vadd.f32 %v1163_v53, %v1160_v52 }
 0x59c   :  { %v1167_v55 = vrot.slane %v1166_v54, 4 }
 0x59e   :  { %v1168_v56 = vadd.f32 %v1167_v55, %v1166_v54  ;;  %v1326_v55 = vrot.slane %v2114_v44, %v629_v2 }
 0x5a0   :  { %v1169_v58 = vrot.slane %v1168_v56, 2 }
 0x5a2   :  { %v1170_v40 = vadd.f32 %v1169_v58, %v1168_v56  ;;  %v1332_v58 = vrot.slane %v2114_v44, %v894_v31 }
 0x5a4   :  { %v1171_v59 = vrot.slane %v1170_v40, 1 }
 0x5a6   :  { %v1172_v60 = vadd.f32 %v1171_v59, %v1170_v40 }
 0x5a8   :  { %v1174_v61 = vmul.f32 0.0625, %v1172_v60 }
 0x5aa   :  { %v1175_v62 = vsub.f32 %v1160_v52, %v1174_v61  ;;  %v1176_v63 = vsub.f32 %v1163_v53, %v1174_v61 }
 0x5ac   :  { %v1177_v0 = vmul.f32 %v1175_v62, %v1175_v62  ;;  %v1178_v4 = vmul.f32 %v1176_v63, %v1176_v63 }
 0x5ae   :  { %v1179_v5 = vadd.f32 %v1178_v4, %v1177_v0 }
 0x5b0   :  { %v1180_v23 = vrot.slane %v1179_v5, 4 }
 0x5b2   :  { %v1181_v6 = vadd.f32 %v1180_v23, %v1179_v5 }
 0x5b4   :  { %v1182_v8 = vrot.slane %v1181_v6, 2 }
 0x5b6   :  { %v1183_v10 = vadd.f32 %v1182_v8, %v1181_v6 }
 0x5b8   :  { %v1184_v12 = vrot.slane %v1183_v10, 1 }
 0x5ba   :  { %v1185_v34 = vadd.f32 %v1184_v12, %v1183_v10 }
 0x5bc   :  { %v1186_v14 = vmul.f32 0.0625, %v1185_v34 }
 0x5be   :  { %v1187_v15 = vadd.f32 1e-05, %v1186_v14 }
 0x5c0   :  { %1739 = vrsqrt.f32 %v1187_v15 }
 0x5ca   :  { %v1740_v17 = vpop.eup %1739 }
 0x5cb   :  { %v1189_v18 = vmul.f32 %v1740_v17, %v1175_v62  ;;  %v1190_v19 = vmul.f32 %v1740_v17, %v1176_v63 }
 0x5cd   :  { %v1196_v21 = vmul.f32 %v1194_v16, %v1190_v19  ;;  %v1195_v25 = vmul.f32 %v1194_v16, %v1189_v18 }
 0x5cf   :  { %v1201_v26 = vadd.f32 %v1200_v20, %v1195_v25  ;;  %v1202_v27 = vadd.f32 %v1200_v20, %v1196_v21 }
 0x5d1   :  { %v1203_v29 = vmax.f32 %v1201_v26, 0.0  ;;  %v1204_v30 = vmax.f32 %v1202_v27, 0.0 }
 0x5d3   :  { %v1205_v7 = vpack.c.bf16 %v1204_v30, %v1203_v29 }
 0x5d5   :  { %1600 = vmatmul.mubr.bf16.vlgmr.msra.gmra.mrb[12].mxu1 %v1205_v7 }
 0x6a8   :  { %v1292_v57 = vpop.f32.mrb[12].mxu1 }
 0x6a9   :  { %v1601_v37 = vpop.f32.mrb[13].mxu1  ;;  %v1293_v33 = vadd.f32 %v1292_v57, %v1209_v35 }
 0x6aa   :  { %v1295_v1 = vpop.f32.mrb[14].mxu1 }
 0x6ab   :  { %v1296_v32 = vadd.f32 %v1295_v1, %v1209_v35  ;;  %v1602_v28 = vpop.f32.mrb[15].mxu1 }
 0x6ad   :  { %v1299_v36 = vadd.f32 %v1296_v32, %v1293_v33 }
 0x6af   :  { %v1300_v9 = vrot.slane %v1299_v36, 4 }
 0x6b1   :  { %v1301_v38 = vadd.f32 %v1300_v9, %v1299_v36 }
 0x6b3   :  { %v1302_v24 = vrot.slane %v1301_v38, 2 }
 0x6b5   :  { %v1303_v11 = vadd.f32 %v1302_v24, %v1301_v38 }
 0x6b7   :  { %v1304_v39 = vrot.slane %v1303_v11, 1 }
 0x6b9   :  { %v1305_v3 = vadd.f32 %v1304_v39, %v1303_v11 }
 0x6bb   :  { %v1306_v41 = vmul.f32 0.0625, %v1305_v3 }
 0x6bd   :  { %v1307_v42 = vsub.f32 %v1293_v33, %v1306_v41  ;;  %v1308_v43 = vsub.f32 %v1296_v32, %v1306_v41 }
 0x6bf   :  { %v1309_v45 = vmul.f32 %v1307_v42, %v1307_v42  ;;  %v1310_v46 = vmul.f32 %v1308_v43, %v1308_v43 }
 0x6c1   :  { %v1311_v47 = vadd.f32 %v1310_v46, %v1309_v45 }
 0x6c3   :  { %v1312_v13 = vrot.slane %v1311_v47, 4 }
 0x6c5   :  { %v1313_v48 = vadd.f32 %v1312_v13, %v1311_v47 }
 0x6c7   :  { %v1314_v49 = vrot.slane %v1313_v48, 2 }
 0x6c9   :  { %v1315_v50 = vadd.f32 %v1314_v49, %v1313_v48 }
 0x6cb   :  { %v1316_v51 = vrot.slane %v1315_v50, 1 }
 0x6cd   :  { %v1317_v52 = vadd.f32 %v1316_v51, %v1315_v50 }
 0x6cf   :  { %v1318_v53 = vmul.f32 0.0625, %v1317_v52 }
 0x6d1   :  { %v1319_v54 = vadd.f32 1e-05, %v1318_v53 }
 0x6d3   :  { %1741 = vrsqrt.f32 %v1319_v54 }
 0x6dd   :  { %v1742_v56 = vpop.eup %1741 }
 0x6de   :  { %v1321_v40 = vmul.f32 %v1742_v56, %v1307_v42  ;;  %v1322_v59 = vmul.f32 %v1742_v56, %v1308_v43 }
 0x6e0   :  { %v1328_v60 = vmul.f32 %v1326_v55, %v1322_v59  ;;  %v1327_v61 = vmul.f32 %v1326_v55, %v1321_v40 }
 0x6e2   :  { %v1333_v62 = vadd.f32 %v1332_v58, %v1327_v61  ;;  %v1334_v63 = vadd.f32 %v1332_v58, %v1328_v60 }
 0x6e4   :  { %1335 = vst [vmem:[#allocation11] sm:$0xff] %v1333_v62  ;;  %1336 = vst [vmem:[#allocation11 + $0x8] sm:$0xff] %v1334_v63 }
 0x6e5   :  { %1864 = shalt.err (!%p1861_p2)
}
 0x6e6   :  { %s1865_s9 = scalar_lea.hbm %s2154_s5, 256 }
 0x6e7   :  { %p1866_p3 = scmp.ne.s32.totalorder %s2154_s5, %s1865_s9  ;;  %p1869_p4 = scmp.lt.u32.totalorder %s1865_s9, %s2154_s5 }
 0x6e9   :  { %p1871_p5 = pnand %p1869_p4, %p1866_p3 }
 0x6eb   :  { %1874 = shalt.err (!%p1871_p5)
}
 0x6ec   :  { %1348 = dma.vmem_to_hbm [thread:$0]  %s1343_s30, 256, %s2154_s5, [#allocation4], %s1894_s2, %s1894_s2, %s1895_s18  }
 0x6ed   :  { %1881 = dma.done.wait [#allocation4], 256  }
 0x6ee   :  { %1882 = vsyncadd [#allocation4], 4294967040 }
 0x6ef   :  { %1352 = vsyncpa [#allocation3], 1 }
 0x6f0   :  { %1353 = vsyncpa [#allocation6], 1 }
 0x6f1   :  { %1354 = vsyncpa [#allocation9], 1 }
 0x6f2   :  { %1355 = vsyncpa [#allocation4], 1 }

</bundles_post_ra>
